<compile_context>
chip_gen: v7x
topology: tpu7x:2x2x1
jax: 0.10.0
libtpu: 0.0.40
codegen_flags: <defaults>
</compile_context>

<pallas_src>
import functools

import jax
import jax.numpy as jnp
from jax import lax
from jax.experimental import pallas as pl
from jax.experimental.pallas import tpu as pltpu


def _round_up(x, m):
    return ((x + m - 1) // m) * m


def _pick_chunk(t, max_chunk=32):
    """Largest divisor of t that is <= max_chunk (t itself if t <= max_chunk)."""
    if t <= max_chunk:
        return t
    for c in range(max_chunk, 0, -1):
        if t % c == 0:
            return c
    return 1


# ---------------------------------------------------------------------------
# Fused kernel: all RNN layers + Linear + LogSoftmax.
# Ref order (gridless, whole arrays VMEM-resident):
#   x_ref:        (T, Bp, Pin)  padded time-major input
#   wih_ref[l]:   (Pin, Ph) for layer 0, (Ph, Ph) for layers > 0   (x @ W form)
#   whh_ref:      (L, Ph, Ph)   stacked hidden->hidden weights     (x @ W form)
#   b_ref:        (L, 1, Ph)    combined bias (b_ih + b_hh)
#   wout_ref:     (Ph, Cp)      head weight (padded class cols are 0)
#   bout_ref:     (1, Cp)       head bias   (padded class cols are -1e30)
#   o_ref:        (Bp, Cp)      padded log-probabilities (lane-dense store)
#   seq_scr:      (T, Bp, Ph)   VMEM scratch: PRE / previous-layer sequence
# ---------------------------------------------------------------------------
def fused_rnn_kernel(*refs, num_layers, t_chunk, unroll):
    L = num_layers
    x_ref = refs[0]
    wih_refs = refs[1:1 + L]
    whh_ref, b_ref, wout_ref, bout_ref, o_ref, seq_scr = refs[1 + L:]

    T, Bp, _ = x_ref.shape
    Ph = seq_scr.shape[2]
    n_chunks = T // t_chunk

    h = None
    for layer in range(L):                        # static (trace-time) layer loop
        in_ref = x_ref if layer == 0 else seq_scr
        w_ih = wih_refs[layer][...]               # hoisted weight load
        bias = b_ref[layer]                       # (1, Ph)

        # Chunked hoisted input projection: PRE[t0:t0+tc] = X_chunk @ W_ih + b,
        # written directly into seq_scr so only one chunk is ever live.
        def pre_chunk(c, carry, _in=in_ref, _w=w_ih, _b=bias):
            t0 = c * t_chunk
            xc = _in[pl.ds(t0, t_chunk)]          # (tc, Bp, d)
            d = xc.shape[-1]
            pre = (jnp.dot(xc.reshape(t_chunk * Bp, d), _w,
                           preferred_element_type=jnp.float32) + _b)
            seq_scr[pl.ds(t0, t_chunk)] = pre.reshape(t_chunk, Bp, Ph)
            return carry

        if n_chunks == 1:
            pre_chunk(0, 0)
        else:
            lax.fori_loop(0, n_chunks, pre_chunk, 0)

        w_hh = whh_ref[layer]                     # (Ph, Ph), hoisted
        write_seq = layer < L - 1                 # last layer: only h_T needed

        # TODO(synk): replace per-step jnp.dot with matmul_push_rhs (once per
        # layer) + matmul_acc_lhs/matmul_pop per step to keep W_hh latched.
        def step(t, h_prev, _w_hh=w_hh, _write=write_seq):
            h_new = jnp.tanh(
                seq_scr[t]
                + jnp.dot(h_prev, _w_hh, preferred_element_type=jnp.float32))
            if _write:
                seq_scr[t] = h_new                # becomes next layer's input
            return h_new

        h = lax.fori_loop(0, T, step, jnp.zeros((Bp, Ph), jnp.float32),
                          unroll=unroll)

    # Head: logits -> log-softmax.  Class mask is baked into wout/bout
    # (padded cols: weight 0, bias -1e30), so no iota/select here.
    s = (jnp.dot(h, wout_ref[...], preferred_element_type=jnp.float32)
         + bout_ref[...])
    m = jnp.max(s, axis=-1, keepdims=True)
    lse = jnp.log(jnp.sum(jnp.exp(s - m), axis=-1, keepdims=True)) + m
    o_ref[...] = s - lse


# ---------------------------------------------------------------------------
# One-time parameter prep: transpose to x @ W form, pad per-layer dims, bake
# the class mask into the head bias.
# ---------------------------------------------------------------------------
def prepare_params(params):
    layers = params["layers"]
    L = len(layers)
    H = layers[0][1].shape[0]
    D_in = layers[0][0].shape[1]
    C = params["w_out"].shape[0]

    Ph = _round_up(H, 128)                        # hidden (recurrence) pad
    Pin = _round_up(D_in, 128)                    # layer-0 input pad only
    Cp = _round_up(C, 128)

    wih_list = []
    whh = jnp.zeros((L, Ph, Ph), jnp.float32)
    bias = jnp.zeros((L, 1, Ph), jnp.float32)
    for l, (w_ih, w_hh, b_ih, b_hh) in enumerate(layers):
        d_in = w_ih.shape[1]
        p_in = Pin if l == 0 else Ph
        w = jnp.zeros((p_in, Ph), jnp.float32).at[:d_in, :H].set(
            jnp.transpose(w_ih).astype(jnp.float32))
        wih_list.append(w)
        whh = whh.at[l, :H, :H].set(jnp.transpose(w_hh).astype(jnp.float32))
        bias = bias.at[l, 0, :H].set((b_ih + b_hh).astype(jnp.float32))

    wout = jnp.zeros((Ph, Cp), jnp.float32).at[:H, :C].set(
        jnp.transpose(params["w_out"]).astype(jnp.float32))
    # Padded class columns get -1e30 bias (and 0 weight) => exact mask in the
    # f32 log-softmax, removed from the kernel epilogue.
    bout = jnp.full((1, Cp), -1e30, jnp.float32).at[0, :C].set(
        params["b_out"].astype(jnp.float32))
    return {"wih": wih_list, "whh": whh, "bias": bias, "wout": wout,
            "bout": bout}


# ---------------------------------------------------------------------------
# Forward pass matching RNN.forward (batch_first nn.RNN -> Linear -> LogSoftmax)
# ---------------------------------------------------------------------------
@functools.partial(jax.jit, static_argnames=("num_classes",))
def rnn_forward(x_btd, prep, *, num_classes=5):
    B, T, D_in = x_btd.shape
    L = len(prep["wih"])
    Pin = prep["wih"][0].shape[0]
    Ph = prep["whh"].shape[1]
    Cp = prep["wout"].shape[1]
    Bp = _round_up(B, 8)

    # batch-first -> time-major; single pad op for batch/feature padding.
    x_tbd = jnp.transpose(x_btd.astype(jnp.float32), (1, 0, 2))      # (T, B, D)
    x_pad = jnp.pad(x_tbd, ((0, 0), (0, Bp - B), (0, Pin - D_in)))   # (T,Bp,Pin)

    t_chunk = _pick_chunk(T)
    unroll = True if T <= 32 else 8

    # VMEM residency (f32 elements) + headroom -> explicit scoped-VMEM limit.
    resident_elems = (x_pad.size
                      + sum(int(w.size) for w in prep["wih"])
                      + int(prep["whh"].size) + int(prep["bias"].size)
                      + int(prep["wout"].size) + int(prep["bout"].size)
                      + T * Bp * Ph + Bp * Cp)
    vmem_limit = int(min(max(2 * resident_elems * 4 + (4 << 20), 32 << 20),
                         96 << 20))

    vmem = pl.BlockSpec(memory_space=pltpu.MemorySpace.VMEM)
    out_padded = pl.pallas_call(
        functools.partial(fused_rnn_kernel, num_layers=L, t_chunk=t_chunk,
                          unroll=unroll),
        out_shape=jax.ShapeDtypeStruct((Bp, Cp), jnp.float32),
        in_specs=[vmem] * (1 + L + 4),
        out_specs=vmem,
        scratch_shapes=[pltpu.VMEM((T, Bp, Ph), jnp.float32)],
        compiler_params=pltpu.CompilerParams(vmem_limit_bytes=vmem_limit),
    )(x_pad, *prep["wih"], prep["whh"], prep["bias"], prep["wout"],
      prep["bout"])

    return out_padded[:B, :num_classes]          # (B, 5) log-probabilities


# ---------------------------------------------------------------------------
# Deterministic parameter construction (mirrors nn.RNN / nn.Linear shapes).
# ---------------------------------------------------------------------------
def init_params(key, input_dim, h, num_layers, num_classes=5):
    params = {"layers": []}
    for layer in range(num_layers):
        d_in = input_dim if layer == 0 else h
        k_ih, k_hh, k_bih, k_bhh, key = jax.random.split(key, 5)
        bound = 1.0 / jnp.sqrt(h)
        w_ih = jax.random.uniform(k_ih, (h, d_in), jnp.float32, -bound, bound)
        w_hh = jax.random.uniform(k_hh, (h, h), jnp.float32, -bound, bound)
        b_ih = jax.random.uniform(k_bih, (h,), jnp.float32, -bound, bound)
        b_hh = jax.random.uniform(k_bhh, (h,), jnp.float32, -bound, bound)
        params["layers"].append((w_ih, w_hh, b_ih, b_hh))
    k_w, k_b, key = jax.random.split(key, 3)
    bound = 1.0 / jnp.sqrt(h)
    params["w_out"] = jax.random.uniform(k_w, (num_classes, h), jnp.float32,
                                         -bound, bound)
    params["b_out"] = jax.random.uniform(k_b, (num_classes,), jnp.float32,
                                         -bound, bound)
    return params


# Pure-JAX reference (same math as torch nn.RNN tanh + Linear + log_softmax).
def reference_forward(x_btd, params):
    seq = jnp.transpose(x_btd.astype(jnp.float32), (1, 0, 2))        # (T, B, D)
    T, B, _ = seq.shape
    for (w_ih, w_hh, b_ih, b_hh) in params["layers"]:
        H = w_hh.shape[0]
        h = jnp.zeros((B, H), jnp.float32)
        outs = []
        for t in range(T):
            h = jnp.tanh(seq[t] @ w_ih.T + b_ih + h @ w_hh.T + b_hh)
            outs.append(h)
        seq = jnp.stack(outs)
    s = seq[-1] @ params["w_out"].T + params["b_out"]
    return jax.nn.log_softmax(s, axis=-1)


if __name__ == "__main__":
    B, T, input_dim, hidden, num_layers = 2, 8, 16, 32, 2

    key = jax.random.PRNGKey(0)
    k_x, k_p = jax.random.split(key)
    x = jax.random.normal(k_x, (B, T, input_dim), dtype=jnp.float32)
    params = init_params(k_p, input_dim, hidden, num_layers)
    prep = prepare_params(params)

    out = rnn_forward(x, prep, num_classes=5)
    jax.block_until_ready(out)

    assert out.shape == (B, 5)
    # log-softmax rows must (approximately) exp-sum to 1
    assert jnp.allclose(jnp.sum(jnp.exp(out), axis=-1), 1.0, atol=1e-4)
    # match the pure-JAX reference of the PyTorch module semantics
    ref = reference_forward(x, params)
    assert jnp.allclose(out, ref, atol=1e-4, rtol=1e-4)

    print("KERNEL_OK")
</pallas_src>

<mosaic_0001>
module attributes {stable_mosaic.version = 11 : i64} {
  func.func @fused_rnn_kernel(%arg0: memref<8x8x128xf32, #tpu.memory_space<vmem>>, %arg1: memref<128x128xf32, #tpu.memory_space<vmem>>, %arg2: memref<128x128xf32, #tpu.memory_space<vmem>>, %arg3: memref<2x128x128xf32, #tpu.memory_space<vmem>>, %arg4: memref<2x1x128xf32, #tpu.memory_space<vmem>>, %arg5: memref<128x128xf32, #tpu.memory_space<vmem>>, %arg6: memref<1x128xf32, #tpu.memory_space<vmem>>, %arg7: memref<8x128xf32, #tpu.memory_space<vmem>>, %arg8: memref<8x8x128xf32, #tpu.memory_space<vmem>>) attributes {dimension_semantics = [], scalar_prefetch = 0 : i64, scratch_operands = 1 : i64, tpu.core_type = #tpu.core_type<tc>} {
    %c0 = arith.constant 0 : index
    %c0_0 = arith.constant 0 : index
    %0 = vector.load %arg1[%c0, %c0_0] : memref<128x128xf32, #tpu.memory_space<vmem>>, vector<128x128xf32>
    %c0_1 = arith.constant 0 : index
    %c0_2 = arith.constant 0 : index
    %c0_3 = arith.constant 0 : index
    %1 = vector.load %arg4[%c0_1, %c0_2, %c0_3] : memref<2x1x128xf32, #tpu.memory_space<vmem>>, vector<1x1x128xf32>
    %2 = vector.shape_cast %1 : vector<1x1x128xf32> to vector<1x128xf32>
    %c0_4 = arith.constant 0 : index
    %c0_5 = arith.constant 0 : index
    %c0_6 = arith.constant 0 : index
    %3 = vector.load %arg0[%c0_4, %c0_5, %c0_6] : memref<8x8x128xf32, #tpu.memory_space<vmem>>, vector<8x8x128xf32>
    %4 = vector.shape_cast %3 : vector<8x8x128xf32> to vector<64x128xf32>
    %cst = arith.constant dense<0.000000e+00> : vector<64x128xf32>
    %5 = tpu.matmul %4, %0, %cst {dimension_numbers = #tpu.dot_dimension_numbers<[1], [0], [0], [1], [0, 0, 1, 1], [], []>} : vector<64x128xf32>, vector<128x128xf32>, vector<64x128xf32> -> vector<64x128xf32>
    %6 = vector.broadcast %2 : vector<1x128xf32> to vector<64x128xf32>
    %7 = arith.addf %5, %6 : vector<64x128xf32>
    %8 = vector.shape_cast %7 : vector<64x128xf32> to vector<8x8x128xf32>
    %c0_7 = arith.constant 0 : index
    %c0_8 = arith.constant 0 : index
    %c0_9 = arith.constant 0 : index
    %9 = vector.load %arg8[%c0_7, %c0_8, %c0_9] : memref<8x8x128xf32, #tpu.memory_space<vmem>>, vector<8x8x128xf32>
    tpu.vector_store %arg8[%c0_7, %c0_8, %c0_9], %8 {strides = array<i32>} : memref<8x8x128xf32, #tpu.memory_space<vmem>>, vector<8x8x128xf32>,
    %c0_10 = arith.constant 0 : index
    %c0_11 = arith.constant 0 : index
    %c0_12 = arith.constant 0 : index
    %10 = vector.load %arg3[%c0_10, %c0_11, %c0_12] : memref<2x128x128xf32, #tpu.memory_space<vmem>>, vector<1x128x128xf32>
    %11 = vector.shape_cast %10 : vector<1x128x128xf32> to vector<128x128xf32>
    %cst_13 = arith.constant 0.000000e+00 : f32
    %12 = vector.broadcast %cst_13 : f32 to vector<8x128xf32>
    %c0_i32 = arith.constant 0 : i32
    %13 = arith.index_cast %c0_i32 : i32 to index
    %c0_14 = arith.constant 0 : index
    %c0_15 = arith.constant 0 : index
    %14 = vector.load %arg8[%13, %c0_14, %c0_15] : memref<8x8x128xf32, #tpu.memory_space<vmem>>, vector<1x8x128xf32>
    %15 = vector.shape_cast %14 : vector<1x8x128xf32> to vector<8x128xf32>
    %cst_16 = arith.constant dense<0.000000e+00> : vector<8x128xf32>
    %16 = tpu.matmul %12, %11, %cst_16 {dimension_numbers = #tpu.dot_dimension_numbers<[1], [0], [0], [1], [0, 0, 1, 1], [], []>} : vector<8x128xf32>, vector<128x128xf32>, vector<8x128xf32> -> vector<8x128xf32>
    %17 = arith.addf %15, %16 : vector<8x128xf32>
    %18 = math.tanh %17 : vector<8x128xf32>
    %19 = arith.index_cast %c0_i32 : i32 to index
    %c0_17 = arith.constant 0 : index
    %c0_18 = arith.constant 0 : index
    %20 = vector.load %arg8[%19, %c0_17, %c0_18] : memref<8x8x128xf32, #tpu.memory_space<vmem>>, vector<1x8x128xf32>
    %21 = vector.shape_cast %20 : vector<1x8x128xf32> to vector<8x128xf32>
    %22 = vector.shape_cast %18 : vector<8x128xf32> to vector<1x8x128xf32>
    tpu.vector_store %arg8[%19, %c0_17, %c0_18], %22 {strides = array<i32>} : memref<8x8x128xf32, #tpu.memory_space<vmem>>, vector<1x8x128xf32>,
    %c1_i32 = arith.constant 1 : i32
    %23 = arith.index_cast %c1_i32 : i32 to index
    %c0_19 = arith.constant 0 : index
    %c0_20 = arith.constant 0 : index
    %24 = vector.load %arg8[%23, %c0_19, %c0_20] : memref<8x8x128xf32, #tpu.memory_space<vmem>>, vector<1x8x128xf32>
    %25 = vector.shape_cast %24 : vector<1x8x128xf32> to vector<8x128xf32>
    %cst_21 = arith.constant dense<0.000000e+00> : vector<8x128xf32>
    %26 = tpu.matmul %18, %11, %cst_21 {dimension_numbers = #tpu.dot_dimension_numbers<[1], [0], [0], [1], [0, 0, 1, 1], [], []>} : vector<8x128xf32>, vector<128x128xf32>, vector<8x128xf32> -> vector<8x128xf32>
    %27 = arith.addf %25, %26 : vector<8x128xf32>
    %28 = math.tanh %27 : vector<8x128xf32>
    %29 = arith.index_cast %c1_i32 : i32 to index
    %c0_22 = arith.constant 0 : index
    %c0_23 = arith.constant 0 : index
    %30 = vector.load %arg8[%29, %c0_22, %c0_23] : memref<8x8x128xf32, #tpu.memory_space<vmem>>, vector<1x8x128xf32>
    %31 = vector.shape_cast %30 : vector<1x8x128xf32> to vector<8x128xf32>
    %32 = vector.shape_cast %28 : vector<8x128xf32> to vector<1x8x128xf32>
    tpu.vector_store %arg8[%29, %c0_22, %c0_23], %32 {strides = array<i32>} : memref<8x8x128xf32, #tpu.memory_space<vmem>>, vector<1x8x128xf32>,
    %c2_i32 = arith.constant 2 : i32
    %33 = arith.index_cast %c2_i32 : i32 to index
    %c0_24 = arith.constant 0 : index
    %c0_25 = arith.constant 0 : index
    %34 = vector.load %arg8[%33, %c0_24, %c0_25] : memref<8x8x128xf32, #tpu.memory_space<vmem>>, vector<1x8x128xf32>
    %35 = vector.shape_cast %34 : vector<1x8x128xf32> to vector<8x128xf32>
    %cst_26 = arith.constant dense<0.000000e+00> : vector<8x128xf32>
    %36 = tpu.matmul %28, %11, %cst_26 {dimension_numbers = #tpu.dot_dimension_numbers<[1], [0], [0], [1], [0, 0, 1, 1], [], []>} : vector<8x128xf32>, vector<128x128xf32>, vector<8x128xf32> -> vector<8x128xf32>
    %37 = arith.addf %35, %36 : vector<8x128xf32>
    %38 = math.tanh %37 : vector<8x128xf32>
    %39 = arith.index_cast %c2_i32 : i32 to index
    %c0_27 = arith.constant 0 : index
    %c0_28 = arith.constant 0 : index
    %40 = vector.load %arg8[%39, %c0_27, %c0_28] : memref<8x8x128xf32, #tpu.memory_space<vmem>>, vector<1x8x128xf32>
    %41 = vector.shape_cast %40 : vector<1x8x128xf32> to vector<8x128xf32>
    %42 = vector.shape_cast %38 : vector<8x128xf32> to vector<1x8x128xf32>
    tpu.vector_store %arg8[%39, %c0_27, %c0_28], %42 {strides = array<i32>} : memref<8x8x128xf32, #tpu.memory_space<vmem>>, vector<1x8x128xf32>,
    %c3_i32 = arith.constant 3 : i32
    %43 = arith.index_cast %c3_i32 : i32 to index
    %c0_29 = arith.constant 0 : index
    %c0_30 = arith.constant 0 : index
    %44 = vector.load %arg8[%43, %c0_29, %c0_30] : memref<8x8x128xf32, #tpu.memory_space<vmem>>, vector<1x8x128xf32>
    %45 = vector.shape_cast %44 : vector<1x8x128xf32> to vector<8x128xf32>
    %cst_31 = arith.constant dense<0.000000e+00> : vector<8x128xf32>
    %46 = tpu.matmul %38, %11, %cst_31 {dimension_numbers = #tpu.dot_dimension_numbers<[1], [0], [0], [1], [0, 0, 1, 1], [], []>} : vector<8x128xf32>, vector<128x128xf32>, vector<8x128xf32> -> vector<8x128xf32>
    %47 = arith.addf %45, %46 : vector<8x128xf32>
    %48 = math.tanh %47 : vector<8x128xf32>
    %49 = arith.index_cast %c3_i32 : i32 to index
    %c0_32 = arith.constant 0 : index
    %c0_33 = arith.constant 0 : index
    %50 = vector.load %arg8[%49, %c0_32, %c0_33] : memref<8x8x128xf32, #tpu.memory_space<vmem>>, vector<1x8x128xf32>
    %51 = vector.shape_cast %50 : vector<1x8x128xf32> to vector<8x128xf32>
    %52 = vector.shape_cast %48 : vector<8x128xf32> to vector<1x8x128xf32>
    tpu.vector_store %arg8[%49, %c0_32, %c0_33], %52 {strides = array<i32>} : memref<8x8x128xf32, #tpu.memory_space<vmem>>, vector<1x8x128xf32>,
    %c4_i32 = arith.constant 4 : i32
    %53 = arith.index_cast %c4_i32 : i32 to index
    %c0_34 = arith.constant 0 : index
    %c0_35 = arith.constant 0 : index
    %54 = vector.load %arg8[%53, %c0_34, %c0_35] : memref<8x8x128xf32, #tpu.memory_space<vmem>>, vector<1x8x128xf32>
    %55 = vector.shape_cast %54 : vector<1x8x128xf32> to vector<8x128xf32>
    %cst_36 = arith.constant dense<0.000000e+00> : vector<8x128xf32>
    %56 = tpu.matmul %48, %11, %cst_36 {dimension_numbers = #tpu.dot_dimension_numbers<[1], [0], [0], [1], [0, 0, 1, 1], [], []>} : vector<8x128xf32>, vector<128x128xf32>, vector<8x128xf32> -> vector<8x128xf32>
    %57 = arith.addf %55, %56 : vector<8x128xf32>
    %58 = math.tanh %57 : vector<8x128xf32>
    %59 = arith.index_cast %c4_i32 : i32 to index
    %c0_37 = arith.constant 0 : index
    %c0_38 = arith.constant 0 : index
    %60 = vector.load %arg8[%59, %c0_37, %c0_38] : memref<8x8x128xf32, #tpu.memory_space<vmem>>, vector<1x8x128xf32>
    %61 = vector.shape_cast %60 : vector<1x8x128xf32> to vector<8x128xf32>
    %62 = vector.shape_cast %58 : vector<8x128xf32> to vector<1x8x128xf32>
    tpu.vector_store %arg8[%59, %c0_37, %c0_38], %62 {strides = array<i32>} : memref<8x8x128xf32, #tpu.memory_space<vmem>>, vector<1x8x128xf32>,
    %c5_i32 = arith.constant 5 : i32
    %63 = arith.index_cast %c5_i32 : i32 to index
    %c0_39 = arith.constant 0 : index
    %c0_40 = arith.constant 0 : index
    %64 = vector.load %arg8[%63, %c0_39, %c0_40] : memref<8x8x128xf32, #tpu.memory_space<vmem>>, vector<1x8x128xf32>
    %65 = vector.shape_cast %64 : vector<1x8x128xf32> to vector<8x128xf32>
    %cst_41 = arith.constant dense<0.000000e+00> : vector<8x128xf32>
    %66 = tpu.matmul %58, %11, %cst_41 {dimension_numbers = #tpu.dot_dimension_numbers<[1], [0], [0], [1], [0, 0, 1, 1], [], []>} : vector<8x128xf32>, vector<128x128xf32>, vector<8x128xf32> -> vector<8x128xf32>
    %67 = arith.addf %65, %66 : vector<8x128xf32>
    %68 = math.tanh %67 : vector<8x128xf32>
    %69 = arith.index_cast %c5_i32 : i32 to index
    %c0_42 = arith.constant 0 : index
    %c0_43 = arith.constant 0 : index
    %70 = vector.load %arg8[%69, %c0_42, %c0_43] : memref<8x8x128xf32, #tpu.memory_space<vmem>>, vector<1x8x128xf32>
    %71 = vector.shape_cast %70 : vector<1x8x128xf32> to vector<8x128xf32>
    %72 = vector.shape_cast %68 : vector<8x128xf32> to vector<1x8x128xf32>
    tpu.vector_store %arg8[%69, %c0_42, %c0_43], %72 {strides = array<i32>} : memref<8x8x128xf32, #tpu.memory_space<vmem>>, vector<1x8x128xf32>,
    %c6_i32 = arith.constant 6 : i32
    %73 = arith.index_cast %c6_i32 : i32 to index
    %c0_44 = arith.constant 0 : index
    %c0_45 = arith.constant 0 : index
    %74 = vector.load %arg8[%73, %c0_44, %c0_45] : memref<8x8x128xf32, #tpu.memory_space<vmem>>, vector<1x8x128xf32>
    %75 = vector.shape_cast %74 : vector<1x8x128xf32> to vector<8x128xf32>
    %cst_46 = arith.constant dense<0.000000e+00> : vector<8x128xf32>
    %76 = tpu.matmul %68, %11, %cst_46 {dimension_numbers = #tpu.dot_dimension_numbers<[1], [0], [0], [1], [0, 0, 1, 1], [], []>} : vector<8x128xf32>, vector<128x128xf32>, vector<8x128xf32> -> vector<8x128xf32>
    %77 = arith.addf %75, %76 : vector<8x128xf32>
    %78 = math.tanh %77 : vector<8x128xf32>
    %79 = arith.index_cast %c6_i32 : i32 to index
    %c0_47 = arith.constant 0 : index
    %c0_48 = arith.constant 0 : index
    %80 = vector.load %arg8[%79, %c0_47, %c0_48] : memref<8x8x128xf32, #tpu.memory_space<vmem>>, vector<1x8x128xf32>
    %81 = vector.shape_cast %80 : vector<1x8x128xf32> to vector<8x128xf32>
    %82 = vector.shape_cast %78 : vector<8x128xf32> to vector<1x8x128xf32>
    tpu.vector_store %arg8[%79, %c0_47, %c0_48], %82 {strides = array<i32>} : memref<8x8x128xf32, #tpu.memory_space<vmem>>, vector<1x8x128xf32>,
    %c7_i32 = arith.constant 7 : i32
    %83 = arith.index_cast %c7_i32 : i32 to index
    %c0_49 = arith.constant 0 : index
    %c0_50 = arith.constant 0 : index
    %84 = vector.load %arg8[%83, %c0_49, %c0_50] : memref<8x8x128xf32, #tpu.memory_space<vmem>>, vector<1x8x128xf32>
    %85 = vector.shape_cast %84 : vector<1x8x128xf32> to vector<8x128xf32>
    %cst_51 = arith.constant dense<0.000000e+00> : vector<8x128xf32>
    %86 = tpu.matmul %78, %11, %cst_51 {dimension_numbers = #tpu.dot_dimension_numbers<[1], [0], [0], [1], [0, 0, 1, 1], [], []>} : vector<8x128xf32>, vector<128x128xf32>, vector<8x128xf32> -> vector<8x128xf32>
    %87 = arith.addf %85, %86 : vector<8x128xf32>
    %88 = math.tanh %87 : vector<8x128xf32>
    %89 = arith.index_cast %c7_i32 : i32 to index
    %c0_52 = arith.constant 0 : index
    %c0_53 = arith.constant 0 : index
    %90 = vector.load %arg8[%89, %c0_52, %c0_53] : memref<8x8x128xf32, #tpu.memory_space<vmem>>, vector<1x8x128xf32>
    %91 = vector.shape_cast %90 : vector<1x8x128xf32> to vector<8x128xf32>
    %92 = vector.shape_cast %88 : vector<8x128xf32> to vector<1x8x128xf32>
    tpu.vector_store %arg8[%89, %c0_52, %c0_53], %92 {strides = array<i32>} : memref<8x8x128xf32, #tpu.memory_space<vmem>>, vector<1x8x128xf32>,
    %c8_i32 = arith.constant 8 : i32
    %c0_54 = arith.constant 0 : index
    %c0_55 = arith.constant 0 : index
    %93 = vector.load %arg2[%c0_54, %c0_55] : memref<128x128xf32, #tpu.memory_space<vmem>>, vector<128x128xf32>
    %c1 = arith.constant 1 : index
    %c0_56 = arith.constant 0 : index
    %c0_57 = arith.constant 0 : index
    %94 = vector.load %arg4[%c1, %c0_56, %c0_57] : memref<2x1x128xf32, #tpu.memory_space<vmem>>, vector<1x1x128xf32>
    %95 = vector.shape_cast %94 : vector<1x1x128xf32> to vector<1x128xf32>
    %c0_58 = arith.constant 0 : index
    %c0_59 = arith.constant 0 : index
    %c0_60 = arith.constant 0 : index
    %96 = vector.load %arg8[%c0_58, %c0_59, %c0_60] : memref<8x8x128xf32, #tpu.memory_space<vmem>>, vector<8x8x128xf32>
    %97 = vector.shape_cast %96 : vector<8x8x128xf32> to vector<64x128xf32>
    %cst_61 = arith.constant dense<0.000000e+00> : vector<64x128xf32>
    %98 = tpu.matmul %97, %93, %cst_61 {dimension_numbers = #tpu.dot_dimension_numbers<[1], [0], [0], [1], [0, 0, 1, 1], [], []>} : vector<64x128xf32>, vector<128x128xf32>, vector<64x128xf32> -> vector<64x128xf32>
    %99 = vector.broadcast %95 : vector<1x128xf32> to vector<64x128xf32>
    %100 = arith.addf %98, %99 : vector<64x128xf32>
    %101 = vector.shape_cast %100 : vector<64x128xf32> to vector<8x8x128xf32>
    %c0_62 = arith.constant 0 : index
    %c0_63 = arith.constant 0 : index
    %c0_64 = arith.constant 0 : index
    %102 = vector.load %arg8[%c0_62, %c0_63, %c0_64] : memref<8x8x128xf32, #tpu.memory_space<vmem>>, vector<8x8x128xf32>
    tpu.vector_store %arg8[%c0_62, %c0_63, %c0_64], %101 {strides = array<i32>} : memref<8x8x128xf32, #tpu.memory_space<vmem>>, vector<8x8x128xf32>,
    %c1_65 = arith.constant 1 : index
    %c0_66 = arith.constant 0 : index
    %c0_67 = arith.constant 0 : index
    %103 = vector.load %arg3[%c1_65, %c0_66, %c0_67] : memref<2x128x128xf32, #tpu.memory_space<vmem>>, vector<1x128x128xf32>
    %104 = vector.shape_cast %103 : vector<1x128x128xf32> to vector<128x128xf32>
    %cst_68 = arith.constant 0.000000e+00 : f32
    %105 = vector.broadcast %cst_68 : f32 to vector<8x128xf32>
    %c0_i32_69 = arith.constant 0 : i32
    %106 = arith.index_cast %c0_i32_69 : i32 to index
    %c0_70 = arith.constant 0 : index
    %c0_71 = arith.constant 0 : index
    %107 = vector.load %arg8[%106, %c0_70, %c0_71] : memref<8x8x128xf32, #tpu.memory_space<vmem>>, vector<1x8x128xf32>
    %108 = vector.shape_cast %107 : vector<1x8x128xf32> to vector<8x128xf32>
    %cst_72 = arith.constant dense<0.000000e+00> : vector<8x128xf32>
    %109 = tpu.matmul %105, %104, %cst_72 {dimension_numbers = #tpu.dot_dimension_numbers<[1], [0], [0], [1], [0, 0, 1, 1], [], []>} : vector<8x128xf32>, vector<128x128xf32>, vector<8x128xf32> -> vector<8x128xf32>
    %110 = arith.addf %108, %109 : vector<8x128xf32>
    %111 = math.tanh %110 : vector<8x128xf32>
    %c1_i32_73 = arith.constant 1 : i32
    %112 = arith.index_cast %c1_i32_73 : i32 to index
    %c0_74 = arith.constant 0 : index
    %c0_75 = arith.constant 0 : index
    %113 = vector.load %arg8[%112, %c0_74, %c0_75] : memref<8x8x128xf32, #tpu.memory_space<vmem>>, vector<1x8x128xf32>
    %114 = vector.shape_cast %113 : vector<1x8x128xf32> to vector<8x128xf32>
    %cst_76 = arith.constant dense<0.000000e+00> : vector<8x128xf32>
    %115 = tpu.matmul %111, %104, %cst_76 {dimension_numbers = #tpu.dot_dimension_numbers<[1], [0], [0], [1], [0, 0, 1, 1], [], []>} : vector<8x128xf32>, vector<128x128xf32>, vector<8x128xf32> -> vector<8x128xf32>
    %116 = arith.addf %114, %115 : vector<8x128xf32>
    %117 = math.tanh %116 : vector<8x128xf32>
    %c2_i32_77 = arith.constant 2 : i32
    %118 = arith.index_cast %c2_i32_77 : i32 to index
    %c0_78 = arith.constant 0 : index
    %c0_79 = arith.constant 0 : index
    %119 = vector.load %arg8[%118, %c0_78, %c0_79] : memref<8x8x128xf32, #tpu.memory_space<vmem>>, vector<1x8x128xf32>
    %120 = vector.shape_cast %119 : vector<1x8x128xf32> to vector<8x128xf32>
    %cst_80 = arith.constant dense<0.000000e+00> : vector<8x128xf32>
    %121 = tpu.matmul %117, %104, %cst_80 {dimension_numbers = #tpu.dot_dimension_numbers<[1], [0], [0], [1], [0, 0, 1, 1], [], []>} : vector<8x128xf32>, vector<128x128xf32>, vector<8x128xf32> -> vector<8x128xf32>
    %122 = arith.addf %120, %121 : vector<8x128xf32>
    %123 = math.tanh %122 : vector<8x128xf32>
    %c3_i32_81 = arith.constant 3 : i32
    %124 = arith.index_cast %c3_i32_81 : i32 to index
    %c0_82 = arith.constant 0 : index
    %c0_83 = arith.constant 0 : index
    %125 = vector.load %arg8[%124, %c0_82, %c0_83] : memref<8x8x128xf32, #tpu.memory_space<vmem>>, vector<1x8x128xf32>
    %126 = vector.shape_cast %125 : vector<1x8x128xf32> to vector<8x128xf32>
    %cst_84 = arith.constant dense<0.000000e+00> : vector<8x128xf32>
    %127 = tpu.matmul %123, %104, %cst_84 {dimension_numbers = #tpu.dot_dimension_numbers<[1], [0], [0], [1], [0, 0, 1, 1], [], []>} : vector<8x128xf32>, vector<128x128xf32>, vector<8x128xf32> -> vector<8x128xf32>
    %128 = arith.addf %126, %127 : vector<8x128xf32>
    %129 = math.tanh %128 : vector<8x128xf32>
    %c4_i32_85 = arith.constant 4 : i32
    %130 = arith.index_cast %c4_i32_85 : i32 to index
    %c0_86 = arith.constant 0 : index
    %c0_87 = arith.constant 0 : index
    %131 = vector.load %arg8[%130, %c0_86, %c0_87] : memref<8x8x128xf32, #tpu.memory_space<vmem>>, vector<1x8x128xf32>
    %132 = vector.shape_cast %131 : vector<1x8x128xf32> to vector<8x128xf32>
    %cst_88 = arith.constant dense<0.000000e+00> : vector<8x128xf32>
    %133 = tpu.matmul %129, %104, %cst_88 {dimension_numbers = #tpu.dot_dimension_numbers<[1], [0], [0], [1], [0, 0, 1, 1], [], []>} : vector<8x128xf32>, vector<128x128xf32>, vector<8x128xf32> -> vector<8x128xf32>
    %134 = arith.addf %132, %133 : vector<8x128xf32>
    %135 = math.tanh %134 : vector<8x128xf32>
    %c5_i32_89 = arith.constant 5 : i32
    %136 = arith.index_cast %c5_i32_89 : i32 to index
    %c0_90 = arith.constant 0 : index
    %c0_91 = arith.constant 0 : index
    %137 = vector.load %arg8[%136, %c0_90, %c0_91] : memref<8x8x128xf32, #tpu.memory_space<vmem>>, vector<1x8x128xf32>
    %138 = vector.shape_cast %137 : vector<1x8x128xf32> to vector<8x128xf32>
    %cst_92 = arith.constant dense<0.000000e+00> : vector<8x128xf32>
    %139 = tpu.matmul %135, %104, %cst_92 {dimension_numbers = #tpu.dot_dimension_numbers<[1], [0], [0], [1], [0, 0, 1, 1], [], []>} : vector<8x128xf32>, vector<128x128xf32>, vector<8x128xf32> -> vector<8x128xf32>
    %140 = arith.addf %138, %139 : vector<8x128xf32>
    %141 = math.tanh %140 : vector<8x128xf32>
    %c6_i32_93 = arith.constant 6 : i32
    %142 = arith.index_cast %c6_i32_93 : i32 to index
    %c0_94 = arith.constant 0 : index
    %c0_95 = arith.constant 0 : index
    %143 = vector.load %arg8[%142, %c0_94, %c0_95] : memref<8x8x128xf32, #tpu.memory_space<vmem>>, vector<1x8x128xf32>
    %144 = vector.shape_cast %143 : vector<1x8x128xf32> to vector<8x128xf32>
    %cst_96 = arith.constant dense<0.000000e+00> : vector<8x128xf32>
    %145 = tpu.matmul %141, %104, %cst_96 {dimension_numbers = #tpu.dot_dimension_numbers<[1], [0], [0], [1], [0, 0, 1, 1], [], []>} : vector<8x128xf32>, vector<128x128xf32>, vector<8x128xf32> -> vector<8x128xf32>
    %146 = arith.addf %144, %145 : vector<8x128xf32>
    %147 = math.tanh %146 : vector<8x128xf32>
    %c7_i32_97 = arith.constant 7 : i32
    %148 = arith.index_cast %c7_i32_97 : i32 to index
    %c0_98 = arith.constant 0 : index
    %c0_99 = arith.constant 0 : index
    %149 = vector.load %arg8[%148, %c0_98, %c0_99] : memref<8x8x128xf32, #tpu.memory_space<vmem>>, vector<1x8x128xf32>
    %150 = vector.shape_cast %149 : vector<1x8x128xf32> to vector<8x128xf32>
    %cst_100 = arith.constant dense<0.000000e+00> : vector<8x128xf32>
    %151 = tpu.matmul %147, %104, %cst_100 {dimension_numbers = #tpu.dot_dimension_numbers<[1], [0], [0], [1], [0, 0, 1, 1], [], []>} : vector<8x128xf32>, vector<128x128xf32>, vector<8x128xf32> -> vector<8x128xf32>
    %152 = arith.addf %150, %151 : vector<8x128xf32>
    %153 = math.tanh %152 : vector<8x128xf32>
    %c8_i32_101 = arith.constant 8 : i32
    %c0_102 = arith.constant 0 : index
    %c0_103 = arith.constant 0 : index
    %154 = vector.load %arg5[%c0_102, %c0_103] : memref<128x128xf32, #tpu.memory_space<vmem>>, vector<128x128xf32>
    %cst_104 = arith.constant dense<0.000000e+00> : vector<8x128xf32>
    %155 = tpu.matmul %153, %154, %cst_104 {dimension_numbers = #tpu.dot_dimension_numbers<[1], [0], [0], [1], [0, 0, 1, 1], [], []>} : vector<8x128xf32>, vector<128x128xf32>, vector<8x128xf32> -> vector<8x128xf32>
    %c0_105 = arith.constant 0 : index
    %c0_106 = arith.constant 0 : index
    %156 = vector.load %arg6[%c0_105, %c0_106] : memref<1x128xf32, #tpu.memory_space<vmem>>, vector<1x128xf32>
    %157 = vector.broadcast %156 : vector<1x128xf32> to vector<8x128xf32>
    %158 = arith.addf %155, %157 : vector<8x128xf32>
    %cst_107 = arith.constant dense<0xFF800000> : vector<8xf32>
    %159 = vector.multi_reduction <maximumf>, %158, %cst_107 [1] : vector<8x128xf32> to vector<8xf32>
    %160 = vector.shape_cast %159 : vector<8xf32> to vector<8x1xf32>
    %161 = vector.broadcast %160 : vector<8x1xf32> to vector<8x128xf32>
    %162 = arith.subf %158, %161 : vector<8x128xf32>
    %163 = math.exp %162 : vector<8x128xf32>
    %cst_108 = arith.constant dense<0.000000e+00> : vector<8xf32>
    %164 = vector.multi_reduction <add>, %163, %cst_108 [1] : vector<8x128xf32> to vector<8xf32>
    %165 = vector.shape_cast %164 : vector<8xf32> to vector<8x1xf32>
    %166 = math.log %165 : vector<8x1xf32>
    %167 = arith.addf %166, %160 : vector<8x1xf32>
    %168 = vector.broadcast %167 : vector<8x1xf32> to vector<8x128xf32>
    %169 = arith.subf %158, %168 : vector<8x128xf32>
    %c0_109 = arith.constant 0 : index
    %c0_110 = arith.constant 0 : index
    %170 = vector.load %arg7[%c0_109, %c0_110] : memref<8x128xf32, #tpu.memory_space<vmem>>, vector<8x128xf32>
    tpu.vector_store %arg7[%c0_109, %c0_110], %169 {strides = array<i32>} : memref<8x128xf32, #tpu.memory_space<vmem>>, vector<8x128xf32>,
    return
  }
}

</mosaic_0001>

<bundles_post_ra>
// kernel: rnn_forward.1
= control target key start
LH: loop header
LB: loop body
LE: loop exit
PB: predicated region body
PF: predicated region fallthrough
CT: control target
= control target key end

     0   :  { %12 = vsyncpa [#allocation4], 0  ;;  %s3983_s0 = inlined_call_operand.vmem [shape: f32[8,8,128], index: 0, kind: input, shape index: {}]   ;;  %s3984_s1 = inlined_call_operand.vmem [shape: f32[128,128], index: 1, kind: input, shape index: {}]   ;;  %s3985_s2 = inlined_call_operand.hbm [shape: f32[128,128], index: 2, kind: input, shape index: {}]   ;;  %s3986_s3 = inlined_call_operand.hbm [shape: f32[2,128,128], index: 3, kind: input, shape index: {}]   ;;  %s3987_s4 = inlined_call_operand.hbm [shape: f32[2,1,128], index: 4, kind: input, shape index: {}]   ;;  %s3988_s5 = inlined_call_operand.hbm [shape: f32[128,128], index: 5, kind: input, shape index: {}]   ;;  %s3989_s6 = inlined_call_operand.hbm [shape: f32[1,128], index: 6, kind: input, shape index: {}]   ;;  %s3990_s7 = inlined_call_operand.vmem [shape: f32[8,128], index: 7, kind: output, shape index: {}]  }
   0x1   :  { %13 = vsyncpa [#allocation6], 0 }
   0x2   :  { %14 = vsyncpa [#allocation9], 0  ;;  %s3368_s24 = smov [#allocation5]   ;;  %s3369_s26 = smov [#allocation8]  }
   0x3   :  { %s36_s25 = sshll.u32 %s3368_s24, 4  ;;  %s60_s27 = sshll.u32 %s3369_s26, 4  ;;  %s37_s25 = int_to_ptr.vmem [resolvable:$true] %s36_s25  ;;  %s3420_s27 = int_to_ptr.vmem [resolvable:$true] %s60_s27 }
   0x4   :  { %s3252_s30 = scalar_lea.hbm %s3986_s3, 4096 }
   0x5   :  { %p3253_p0 = scmp.ne.s32.totalorder %s3986_s3, %s3252_s30  ;;  %p3256_p1 = scmp.lt.u32.totalorder %s3252_s30, %s3986_s3 }
   0x7   :  { %p3258_p2 = pnand %p3256_p1, %p3253_p0 }
   0x9   :  { %3261 = shalt.err (!%p3258_p2)
}
   0xa   :  { %s3262_s12 = scalar_lea.vmem %s37_s25, 4096  ;;  %p3267_p4 = scmp.lt.s32.totalorder %s37_s25, %s37_s25 }
   0xb   :  { %p3263_p3 = scmp.ne.s32.totalorder %s37_s25, %s3262_s12  ;;  %p3268_p5 = scmp.lt.s32.totalorder %s3262_s12, %s3262_s12 }
   0xd   :  { %p3269_p6 = por %p3268_p5, %p3267_p4 }
   0xf   :  { %p3270_p7 = pnand %p3269_p6, %p3263_p3 }
  0x11   :  { %3273 = shalt.err (!%p3270_p7)
}
  0x12   :  { %s3370_s13 = smov 128   ;;  %s3371_s14 = smov 8  }
  0x13   :  { %42 = dma.hbm_to_vmem [thread:$0]  %s3986_s3, 4096, %s37_s25, [#allocation6], %s3370_s13, %s3370_s13, %s3371_s14  }
  0x14   :  { %s3274_s19 = scalar_lea.hbm %s3988_s5, 2048 }
  0x15   :  { %p3275_p8 = scmp.ne.s32.totalorder %s3988_s5, %s3274_s19  ;;  %p3278_p9 = scmp.lt.u32.totalorder %s3274_s19, %s3988_s5 }
  0x17   :  { %p3280_p10 = pnand %p3278_p9, %p3275_p8 }
  0x19   :  { %3283 = shalt.err (!%p3280_p10)
}
  0x1a   :  { %s3284_s24 = scalar_lea.vmem %s3420_s27, 2048  ;;  %p3289_p12 = scmp.lt.s32.totalorder %s3420_s27, %s3420_s27 }
  0x1b   :  { %p3285_p11 = scmp.ne.s32.totalorder %s3420_s27, %s3284_s24  ;;  %p3290_p13 = scmp.lt.s32.totalorder %s3284_s24, %s3284_s24 }
  0x1d   :  { %p3291_p0 = por %p3290_p13, %p3289_p12 }
  0x1f   :  { %p3292_p1 = pnand %p3291_p0, %p3285_p11 }
  0x21   :  { %3295 = shalt.err (!%p3292_p1)
}
  0x22   :  { %66 = dma.hbm_to_vmem [thread:$0]  %s3988_s5, 2048, %s3420_s27, [#allocation9], %s3370_s13, %s3370_s13, %s3371_s14  }
  0x23   :  { %s3372_s26 = smov [#allocation3]   ;;  %s3373_s29 = smov [#allocation7]  }
  0x24   :  { %s24_s28 = sshll.u32 %s3372_s26, 4  ;;  %s48_s30 = sshll.u32 %s3373_s29, 4  ;;  %s25_s28 = int_to_ptr.vmem [resolvable:$true] %s24_s28  ;;  %s3457_s30 = int_to_ptr.vmem [resolvable:$true] %s48_s30 }
  0x25   :  { %s3296_s10 = scalar_lea.hbm %s3985_s2, 2048 }
  0x26   :  { %p3297_p2 = scmp.ne.s32.totalorder %s3985_s2, %s3296_s10  ;;  %p3300_p3 = scmp.lt.u32.totalorder %s3296_s10, %s3985_s2 }
  0x28   :  { %p3302_p4 = pnand %p3300_p3, %p3297_p2 }
  0x2a   :  { %3305 = shalt.err (!%p3302_p4)
}
  0x2b   :  { %s3306_s5 = scalar_lea.vmem %s25_s28, 2048  ;;  %p3311_p6 = scmp.lt.s32.totalorder %s25_s28, %s25_s28 }
  0x2c   :  { %p3307_p5 = scmp.ne.s32.totalorder %s25_s28, %s3306_s5  ;;  %p3312_p7 = scmp.lt.s32.totalorder %s3306_s5, %s3306_s5 }
  0x2e   :  { %p3313_p8 = por %p3312_p7, %p3311_p6 }
  0x30   :  { %p3314_p9 = pnand %p3313_p8, %p3307_p5 }
  0x32   :  { %3317 = shalt.err (!%p3314_p9)
}
  0x33   :  { %30 = dma.hbm_to_vmem [thread:$0]  %s3985_s2, 2048, %s25_s28, [#allocation4], %s3370_s13, %s3370_s13, %s3371_s14  }
  0x34   :  { %s3318_s20 = scalar_lea.hbm %s3987_s4, 32 }
  0x35   :  { %p3319_p10 = scmp.ne.s32.totalorder %s3987_s4, %s3318_s20  ;;  %p3322_p11 = scmp.lt.u32.totalorder %s3318_s20, %s3987_s4 }
  0x37   :  { %p3324_p12 = pnand %p3322_p11, %p3319_p10 }
  0x39   :  { %3327 = shalt.err (!%p3324_p12)
}
  0x3a   :  { %s3328_s3 = scalar_lea.vmem %s3457_s30, 32  ;;  %p3333_p0 = scmp.lt.s32.totalorder %s3457_s30, %s3457_s30 }
  0x3b   :  { %p3329_p13 = scmp.ne.s32.totalorder %s3457_s30, %s3328_s3  ;;  %p3334_p1 = scmp.lt.s32.totalorder %s3328_s3, %s3328_s3 }
  0x3d   :  { %p3335_p2 = por %p3334_p1, %p3333_p0 }
  0x3f   :  { %p3336_p3 = pnand %p3335_p2, %p3329_p13 }
  0x41   :  { %3339 = shalt.err (!%p3336_p3)
}
  0x42   :  { %s3374_s2 = smov 16   ;;  %s3375_s13 = smov 1  }
  0x43   :  { %54 = dma.hbm_to_vmem [thread:$0]  %s3987_s4, 32, %s3457_s30, [#allocation6], %s3374_s2, %s3374_s2, %s3375_s13  }
  0x44   :  { %s3376_s26 = smov [#allocation10]   ;;  %s3340_s9 = scalar_lea.hbm %s3989_s6, 16 }
  0x45   :  { %s73_s28 = sshll.u32 %s3376_s26, 4  ;;  %p3341_p4 = scmp.ne.s32.totalorder %s3989_s6, %s3340_s9  ;;  %s74_s28 = int_to_ptr.vmem [resolvable:$true] %s73_s28 }
  0x46   :  { %p3344_p5 = scmp.lt.u32.totalorder %s3340_s9, %s3989_s6 }
  0x48   :  { %p3346_p6 = pnand %p3344_p5, %p3341_p4 }
  0x4a   :  { %3349 = shalt.err (!%p3346_p6)
}
  0x4b   :  { %s3350_s16 = scalar_lea.vmem %s74_s28, 16  ;;  %s3354_s4 = scalar_lea.vmem %s74_s28, 32 }
  0x4c   :  { %p3351_p7 = scmp.ne.s32.totalorder %s74_s28, %s3350_s16  ;;  %p3355_p8 = scmp.lt.s32.totalorder %s74_s28, %s74_s28 }
  0x4d   :  { %p3356_p9 = scmp.lt.s32.totalorder %s3354_s4, %s3350_s16 }
  0x4f   :  { %p3357_p10 = por %p3356_p9, %p3355_p8 }
  0x51   :  { %p3358_p11 = pnand %p3357_p10, %p3351_p7 }
  0x53   :  { %3361 = shalt.err (!%p3358_p11)
}
  0x54   :  { %76 = dma.hbm_to_vmem [thread:$0]  %s3989_s6, 16, %s74_s28, [#allocation9]  }
  0x55   :  { %3362 = dma.done.wait [#allocation4], 2048  }
  0x56   :  { %3363 = vsyncadd [#allocation4], 4294965248 }
  0x57   :  { %3364 = dma.done.wait [#allocation6], 4128  }
  0x58   :  { %3365 = vsyncadd [#allocation6], 4294963168 }
  0x59   :  { %3366 = dma.done.wait [#allocation9], 2064  }
  0x5a   :  { %3367 = vsyncadd [#allocation9], 4294965232  ;;  %v3377_v0 = vmov 0.0|0.0   ;;  %vm3378_vm0 = vmmov 0   ;;  %v3379_v1 = vmov 0.0   ;;  %v92_v2 = vld [vmem:[%s3984_s1] sm:$0xff] }
  0x5b   :  { %2764 = vmatprep.subr.bf16.mxu1 %v3377_v0  ;;  %2125 = vmatprep.mubr.msk.f32.mxu1 %vm3378_vm0, %v3379_v1  ;;  %v93_v3 = vld [vmem:[%s3984_s1 + $0x8] sm:$0xff]  ;;  %v236_v4 = vld [vmem:[#allocation5] sm:$0xff]  ;;  %v94_v7 = vld [vmem:[%s3984_s1 + $0x10] sm:$0xff] }
  0x5c   :  { %v2732_v5 = vpack.c.bf16 %v93_v3, %v92_v2  ;;  %v237_v6 = vld [vmem:[#allocation5 + $0x8] sm:$0xff]  ;;  %v95_v8 = vld [vmem:[%s3984_s1 + $0x18] sm:$0xff]  ;;  %v238_v11 = vld [vmem:[#allocation5 + $0x10] sm:$0xff] }
  0x5d   :  { %v3518_v9 = vpack.c.bf16 %v237_v6, %v236_v4  ;;  %v2736_v10 = vpack.c.bf16 %v95_v8, %v94_v7  ;;  %v239_v12 = vld [vmem:[#allocation5 + $0x18] sm:$0xff]  ;;  %v96_v13 = vld [vmem:[%s3984_s1 + $0x20] sm:$0xff]  ;;  %v97_v14 = vld [vmem:[%s3984_s1 + $0x28] sm:$0xff] }
  0x5e   :  { %2733 = vmatprep.subr.bf16.mxu0 %v2732_v5  ;;  %v3527_v15 = vpack.c.bf16 %v239_v12, %v238_v11  ;;  %v2740_v16 = vpack.c.bf16 %v97_v14, %v96_v13  ;;  %v240_v17 = vld [vmem:[#allocation5 + $0x20] sm:$0xff]  ;;  %v241_v18 = vld [vmem:[#allocation5 + $0x28] sm:$0xff]  ;;  %v98_v19 = vld [vmem:[%s3984_s1 + $0x30] sm:$0xff] }
  0x5f   :  { %2735 = vmatpush3.bf16.msra.mxu0 %v2732_v5  ;;  %2766 = vmatpush3.bf16.msra.mxu1 %v3518_v9  ;;  %v99_v20 = vld [vmem:[%s3984_s1 + $0x38] sm:$0xff]  ;;  %v3537_v21 = vpack.c.bf16 %v241_v18, %v240_v17  ;;  %v242_v23 = vld [vmem:[#allocation5 + $0x30] sm:$0xff]  ;;  %v100_v25 = vld [vmem:[%s3984_s1 + $0x40] sm:$0xff] }
  0x60   :  { %2737 = vmatprep.subr.bf16.mxu0 %v2736_v10  ;;  %2767 = vmatprep.subr.bf16.mxu1 %v3377_v0  ;;  %v2744_v22 = vpack.c.bf16 %v99_v20, %v98_v19  ;;  %v243_v24 = vld [vmem:[#allocation5 + $0x38] sm:$0xff]  ;;  %v101_v26 = vld [vmem:[%s3984_s1 + $0x48] sm:$0xff]  ;;  %v109_v27 = vld [vmem:[%s3983_s0] sm:$0xff] }
  0x61   :  { %2081 = vmatprep.mubr.f32.mxu0 %v109_v27  ;;  %v3550_v28 = vpack.c.bf16 %v243_v24, %v242_v23  ;;  %v2748_v29 = vpack.c.bf16 %v101_v26, %v100_v25  ;;  %v244_v30 = vld [vmem:[#allocation5 + $0x40] sm:$0xff]  ;;  %v245_v31 = vld [vmem:[#allocation5 + $0x48] sm:$0xff]  ;;  %v102_v32 = vld [vmem:[%s3984_s1 + $0x50] sm:$0xff] }
  0x62   :  { %v103_v33 = vld [vmem:[%s3984_s1 + $0x58] sm:$0xff]  ;;  %v3560_v34 = vpack.c.bf16 %v245_v31, %v244_v30  ;;  %v246_v36 = vld [vmem:[#allocation5 + $0x50] sm:$0xff]  ;;  %v104_v38 = vld [vmem:[%s3984_s1 + $0x60] sm:$0xff] }
  0x63   :  { %2739 = vmatpush3.bf16.msra.mxu0 %v2736_v10  ;;  %2769 = vmatpush3.bf16.msra.mxu1 %v3527_v15  ;;  %v2752_v35 = vpack.c.bf16 %v103_v33, %v102_v32  ;;  %v247_v37 = vld [vmem:[#allocation5 + $0x58] sm:$0xff]  ;;  %v105_v39 = vld [vmem:[%s3984_s1 + $0x68] sm:$0xff]  ;;  %v248_v42 = vld [vmem:[#allocation5 + $0x60] sm:$0xff] }
  0x64   :  { %2741 = vmatprep.subr.bf16.mxu0 %v2740_v16  ;;  %2770 = vmatprep.subr.bf16.mxu1 %v3377_v0  ;;  %v3570_v40 = vpack.c.bf16 %v247_v37, %v246_v36  ;;  %v2756_v41 = vpack.c.bf16 %v105_v39, %v104_v38  ;;  %v249_v43 = vld [vmem:[#allocation5 + $0x68] sm:$0xff]  ;;  %v106_v44 = vld [vmem:[%s3984_s1 + $0x70] sm:$0xff]  ;;  %v107_v45 = vld [vmem:[%s3984_s1 + $0x78] sm:$0xff] }
  0x65   :  { %v3580_v46 = vpack.c.bf16 %v249_v43, %v248_v42  ;;  %v2760_v47 = vpack.c.bf16 %v107_v45, %v106_v44  ;;  %v250_v48 = vld [vmem:[#allocation5 + $0x70] sm:$0xff]  ;;  %v251_v49 = vld [vmem:[#allocation5 + $0x78] sm:$0xff]  ;;  %v110_v51 = vld [vmem:[%s3983_s0 + $0x8] sm:$0xff] }
  0x66   :  { %v3584_v50 = vpack.c.bf16 %v251_v49, %v250_v48  ;;  %v111_v52 = vld [vmem:[%s3983_s0 + $0x10] sm:$0xff]  ;;  %v112_v53 = vld [vmem:[%s3983_s0 + $0x18] sm:$0xff]  ;;  %v113_v54 = vld [vmem:[%s3983_s0 + $0x20] sm:$0xff] }
  0x67   :  { %2743 = vmatpush3.bf16.msra.mxu0 %v2740_v16  ;;  %2772 = vmatpush3.bf16.msra.mxu1 %v3537_v21  ;;  %v114_v55 = vld [vmem:[%s3983_s0 + $0x28] sm:$0xff]  ;;  %v115_v56 = vld [vmem:[%s3983_s0 + $0x30] sm:$0xff]  ;;  %v116_v57 = vld [vmem:[%s3983_s0 + $0x38] sm:$0xff] }
  0x68   :  { %2745 = vmatprep.subr.bf16.mxu0 %v2744_v22  ;;  %2773 = vmatprep.subr.bf16.mxu1 %v3377_v0  ;;  %v3648_v58 = vld [vmem:[#allocation7] ss:$0 sm:$0xff]  ;;  %v853_v37 = vld [vmem:[#allocation3 + $0x10] sm:$0xff]  ;;  %v854_v38 = vld [vmem:[#allocation3 + $0x18] sm:$0xff] }
  0x69   :  { %v2960_v39 = vpack.c.bf16 %v854_v38, %v853_v37  ;;  %v856_v42 = vld [vmem:[#allocation3 + $0x28] sm:$0xff]  ;;  %v857_v44 = vld [vmem:[#allocation3 + $0x30] sm:$0xff]  ;;  %v858_v45 = vld [vmem:[#allocation3 + $0x38] sm:$0xff] }
  0x6a   :  { %v860_v48 = vld [vmem:[#allocation3 + $0x48] sm:$0xff] }
  0x6b   :  { %2747 = vmatpush3.bf16.msra.mxu0 %v2744_v22  ;;  %2775 = vmatpush3.bf16.msra.mxu1 %v3550_v28 }
  0x6c   :  { %2749 = vmatprep.subr.bf16.mxu0 %v2748_v29  ;;  %2776 = vmatprep.subr.bf16.mxu1 %v3377_v0 }
  0x6f   :  { %2751 = vmatpush3.bf16.msra.mxu0 %v2748_v29  ;;  %2778 = vmatpush3.bf16.msra.mxu1 %v3560_v34 }
  0x70   :  { %2753 = vmatprep.subr.bf16.mxu0 %v2752_v35  ;;  %2779 = vmatprep.subr.bf16.mxu1 %v3377_v0 }
  0x73   :  { %2755 = vmatpush3.bf16.msra.mxu0 %v2752_v35  ;;  %2781 = vmatpush3.bf16.msra.mxu1 %v3570_v40 }
  0x74   :  { %2757 = vmatprep.subr.bf16.mxu0 %v2756_v41  ;;  %2782 = vmatprep.subr.bf16.mxu1 %v3377_v0 }
  0x77   :  { %2759 = vmatpush3.bf16.msra.mxu0 %v2756_v41  ;;  %2784 = vmatpush3.bf16.msra.mxu1 %v3580_v46  ;;  %v855_v41 = vld [vmem:[#allocation3 + $0x20] sm:$0xff] }
  0x78   :  { %2761 = vmatprep.subr.bf16.mxu0 %v2760_v47  ;;  %2785 = vmatprep.subr.bf16.mxu1 %v3377_v0  ;;  %v2964_v43 = vpack.c.bf16 %v856_v42, %v855_v41 }
  0x7b   :  { %2763 = vmatpush3.bf16.msra.mxu0 %v2760_v47  ;;  %2787 = vmatpush3.bf16.msra.mxu1 %v3584_v50  ;;  %v859_v47 = vld [vmem:[#allocation3 + $0x40] sm:$0xff] }
  0x7c   :  { %2788 = vmatprep.subr.bf16.mxu0 %v3377_v0  ;;  %2812 = vmatprep.subr.bf16.mxu1 %v3377_v0  ;;  %v2972_v49 = vpack.c.bf16 %v860_v48, %v859_v47 }
  0x7e   :  { %2082 = vmatmul.mubr.f32.vlgmr.msra.gmra.mrb[0].mxu0 %v110_v51  ;;  %2126 = vmatmul.mubr.f32.vlgmr.msra.gmra.mrb[0].mxu1 %v3379_v1  ;;  %v862_v51 = vld [vmem:[#allocation3 + $0x58] sm:$0xff] }
  0x7f   :  { %2790 = vmatpush3.bf16.msra.mxu0 %v3518_v9  ;;  %2814 = vmatpush3.bf16.msra.mxu1 %v3518_v9 }
  0x80   :  { %2791 = vmatprep.subr.bf16.mxu0 %v3377_v0  ;;  %2815 = vmatprep.subr.bf16.mxu1 %v3377_v0 }
  0x81   :  { %2195 = vmatprep.mubr.msk.f32.mxu1 %vm3378_vm0, %v3379_v1  ;;  %2084 = vmatprep.mubr.f32.mxu0 %v111_v52 }
  0x82   :  { %2085 = vmatmul.mubr.f32.gmra.mrb[2].mxu0 %v112_v53  ;;  %v863_v53 = vld [vmem:[#allocation3 + $0x60] sm:$0xff] }
  0x83   :  { %2793 = vmatpush3.bf16.msra.mxu0 %v3527_v15  ;;  %2817 = vmatpush3.bf16.msra.mxu1 %v3527_v15 }
  0x84   :  { %2794 = vmatprep.subr.bf16.mxu0 %v3377_v0  ;;  %2818 = vmatprep.subr.bf16.mxu1 %v3377_v0 }
  0x85   :  { %2087 = vmatprep.mubr.f32.mxu0 %v113_v54  ;;  %v864_v54 = vld [vmem:[#allocation3 + $0x68] sm:$0xff] }
  0x86   :  { %2088 = vmatmul.mubr.f32.gmra.mrb[4].mxu0 %v114_v55  ;;  %v2980_v55 = vpack.c.bf16 %v864_v54, %v863_v53 }
  0x87   :  { %2796 = vmatpush3.bf16.msra.mxu0 %v3537_v21  ;;  %2820 = vmatpush3.bf16.msra.mxu1 %v3537_v21 }
  0x88   :  { %2797 = vmatprep.subr.bf16.mxu0 %v3377_v0  ;;  %2821 = vmatprep.subr.bf16.mxu1 %v3377_v0 }
  0x89   :  { %2090 = vmatprep.mubr.f32.mxu0 %v115_v56  ;;  %v865_v56 = vld [vmem:[#allocation3 + $0x70] sm:$0xff] }
  0x8a   :  { %2091 = vmatmul.mubr.f32.gmra.mrb[6].mxu0 %v116_v57  ;;  %v866_v57 = vld [vmem:[#allocation3 + $0x78] sm:$0xff] }
  0x8b   :  { %2799 = vmatpush3.bf16.msra.mxu0 %v3550_v28  ;;  %2823 = vmatpush3.bf16.msra.mxu1 %v3550_v28 }
  0x8c   :  { %2800 = vmatprep.subr.bf16.mxu0 %v3377_v0  ;;  %2824 = vmatprep.subr.bf16.mxu1 %v3377_v0 }
  0x8d   :  { %2160 = vmatprep.mubr.msk.f32.mxu0 %vm3378_vm0, %v3379_v1 }
  0x8f   :  { %2802 = vmatpush3.bf16.msra.mxu0 %v3560_v34  ;;  %2826 = vmatpush3.bf16.msra.mxu1 %v3560_v34 }
  0x90   :  { %2803 = vmatprep.subr.bf16.mxu0 %v3377_v0  ;;  %2827 = vmatprep.subr.bf16.mxu1 %v3377_v0 }
  0x93   :  { %2805 = vmatpush3.bf16.msra.mxu0 %v3570_v40  ;;  %2829 = vmatpush3.bf16.msra.mxu1 %v3570_v40 }
  0x94   :  { %2806 = vmatprep.subr.bf16.mxu0 %v3377_v0  ;;  %2830 = vmatprep.subr.bf16.mxu1 %v3377_v0 }
  0x97   :  { %2808 = vmatpush3.bf16.msra.mxu0 %v3580_v46  ;;  %2832 = vmatpush3.bf16.msra.mxu1 %v3580_v46 }
  0x98   :  { %2809 = vmatprep.subr.bf16.mxu0 %v3377_v0  ;;  %2833 = vmatprep.subr.bf16.mxu1 %v3377_v0 }
  0x9b   :  { %2811 = vmatpush3.bf16.msra.mxu0 %v3584_v50  ;;  %2835 = vmatpush3.bf16.msra.mxu1 %v3584_v50 }
  0x9c   :  { %2836 = vmatprep.subr.bf16.mxu0 %v3377_v0  ;;  %2860 = vmatprep.subr.bf16.mxu1 %v3377_v0 }
 0x151   :  { %v2083_v59 = vpop.f32.mrb[0].mxu0  ;;  %v319_v60 = vpop.f32.mrb[0].mxu1 }
 0x152   :  { %v189_v61 = vpop.f32.mrb[1].mxu0  ;;  %v2127_v62 = vpop.f32.mrb[1].mxu1  ;;  %v195_v11 = vadd.f32 %v2083_v59, %v3648_v58  ;;  %v2984_v59 = vpack.c.bf16 %v866_v57, %v865_v56 }
 0x153   :  { %v190_v63 = vadd.f32 %v3648_v58, %v189_v61  ;;  %v998_v61 = vld [vmem:[#allocation5 + $0x88] sm:$0xff] }
 0x155   :  { %v323_v2 = vadd.f32 %v319_v60, %v190_v63  ;;  %v2086_v4 = vpop.f32.mrb[2].mxu0  ;;  %v997_v60 = vld [vmem:[#allocation5 + $0x80] sm:$0xff]  ;;  %v999_v63 = vld [vmem:[#allocation5 + $0x90] sm:$0xff] }
 0x156   :  { %v199_v5 = vpop.f32.mrb[3].mxu0  ;;  %v205_v23 = vadd.f32 %v2086_v4, %v3648_v58  ;;  %v3776_v62 = vpack.c.bf16 %v998_v61, %v997_v60  ;;  %v1001_v4 = vld [vmem:[#allocation5 + $0xa0] sm:$0xff] }
 0x157   :  { %3216 = vtanh.f32 %v323_v2  ;;  %v200_v17 = vadd.f32 %v3648_v58, %v199_v5  ;;  %v1000_v2 = vld [vmem:[#allocation5 + $0x98] sm:$0xff]  ;;  %v1002_v5 = vld [vmem:[#allocation5 + $0xa8] sm:$0xff] }
 0x159   :  { %v3672_v6 = vpop.f32.mrb[4].mxu0 }
 0x15a   :  { %v3674_v7 = vpop.f32.mrb[5].mxu0 }
 0x15b   :  { %v210_v29 = vadd.f32 %v3648_v58, %v3674_v7  ;;  %v1003_v7 = vld [vmem:[#allocation5 + $0xb0] sm:$0xff] }
 0x15d   :  { %v3676_v8 = vpop.f32.mrb[6].mxu0 }
 0x15e   :  { %v3678_v10 = vpop.f32.mrb[7].mxu0 }
 0x161   :  { %v3651_v3 = vpop.eup %3216 }
 0x162   :  { %2161 = vmatmul.mubr.f32.vlgmr.msra.gmra.mrb[8].mxu0 %v3651_v3 }
 0x163   :  { %2838 = vmatpush3.bf16.msra.mxu0 %v3518_v9  ;;  %2230 = vmatprep.mubr.msk.f32.mxu0 %vm3378_vm0, %v3379_v1 }
 0x164   :  { %2839 = vmatprep.subr.bf16.mxu0 %v3377_v0 }
 0x167   :  { %2841 = vmatpush3.bf16.msra.mxu0 %v3527_v15 }
 0x168   :  { %2842 = vmatprep.subr.bf16.mxu0 %v3377_v0 }
 0x16b   :  { %2844 = vmatpush3.bf16.msra.mxu0 %v3537_v21 }
 0x16c   :  { %2845 = vmatprep.subr.bf16.mxu0 %v3377_v0 }
 0x16f   :  { %2847 = vmatpush3.bf16.msra.mxu0 %v3550_v28 }
 0x170   :  { %2848 = vmatprep.subr.bf16.mxu0 %v3377_v0 }
 0x173   :  { %2850 = vmatpush3.bf16.msra.mxu0 %v3560_v34 }
 0x174   :  { %2851 = vmatprep.subr.bf16.mxu0 %v3377_v0 }
 0x177   :  { %2853 = vmatpush3.bf16.msra.mxu0 %v3570_v40 }
 0x178   :  { %2854 = vmatprep.subr.bf16.mxu0 %v3377_v0 }
 0x17b   :  { %2856 = vmatpush3.bf16.msra.mxu0 %v3580_v46 }
 0x17c   :  { %2857 = vmatprep.subr.bf16.mxu0 %v3377_v0 }
 0x17f   :  { %2859 = vmatpush3.bf16.msra.mxu0 %v3584_v50 }
 0x180   :  { %2884 = vmatprep.subr.bf16.mxu0 %v3377_v0 }
 0x235   :  { %v394_v12 = vpop.f32.mrb[8].mxu0 }
 0x236   :  { %v398_v13 = vadd.f32 %v394_v12, %v195_v11  ;;  %v2162_v14 = vpop.f32.mrb[9].mxu0  ;;  %v1004_v11 = vld [vmem:[#allocation5 + $0xb8] sm:$0xff] }
 0x237   :  { %v3788_v12 = vpack.c.bf16 %v1004_v11, %v1003_v7  ;;  %v1006_v14 = vld [vmem:[#allocation5 + $0xc8] sm:$0xff] }
 0x238   :  { %3218 = vtanh.f32 %v398_v13  ;;  %v1005_v13 = vld [vmem:[#allocation5 + $0xc0] sm:$0xff] }
 0x242   :  { %v3681_v16 = vpop.eup %3218 }
 0x243   :  { %2196 = vmatmul.mubr.f32.vlgmr.msra.gmra.mrb[2].mxu1 %v3681_v16 }
 0x244   :  { %2862 = vmatpush3.bf16.msra.mxu1 %v3518_v9  ;;  %2265 = vmatprep.mubr.msk.f32.mxu1 %vm3378_vm0, %v3379_v1 }
 0x245   :  { %2863 = vmatprep.subr.bf16.mxu1 %v3377_v0 }
 0x248   :  { %2865 = vmatpush3.bf16.msra.mxu1 %v3527_v15 }
 0x249   :  { %2866 = vmatprep.subr.bf16.mxu1 %v3377_v0 }
 0x24c   :  { %2868 = vmatpush3.bf16.msra.mxu1 %v3537_v21 }
 0x24d   :  { %2869 = vmatprep.subr.bf16.mxu1 %v3377_v0 }
 0x250   :  { %2871 = vmatpush3.bf16.msra.mxu1 %v3550_v28 }
 0x251   :  { %2872 = vmatprep.subr.bf16.mxu1 %v3377_v0 }
 0x254   :  { %2874 = vmatpush3.bf16.msra.mxu1 %v3560_v34 }
 0x255   :  { %2875 = vmatprep.subr.bf16.mxu1 %v3377_v0 }
 0x258   :  { %2877 = vmatpush3.bf16.msra.mxu1 %v3570_v40 }
 0x259   :  { %2878 = vmatprep.subr.bf16.mxu1 %v3377_v0 }
 0x25c   :  { %2880 = vmatpush3.bf16.msra.mxu1 %v3580_v46 }
 0x25d   :  { %2881 = vmatprep.subr.bf16.mxu1 %v3377_v0 }
 0x260   :  { %2883 = vmatpush3.bf16.msra.mxu1 %v3584_v50 }
 0x261   :  { %2908 = vmatprep.subr.bf16.mxu1 %v3377_v0 }
 0x316   :  { %v469_v18 = vpop.f32.mrb[2].mxu1 }
 0x317   :  { %v473_v19 = vadd.f32 %v469_v18, %v200_v17  ;;  %v2197_v20 = vpop.f32.mrb[3].mxu1  ;;  %v1007_v17 = vld [vmem:[#allocation5 + $0xd0] sm:$0xff]  ;;  %v1008_v18 = vld [vmem:[#allocation5 + $0xd8] sm:$0xff] }
 0x318   :  { %v1009_v20 = vld [vmem:[#allocation5 + $0xe0] sm:$0xff] }
 0x319   :  { %3220 = vtanh.f32 %v473_v19  ;;  %v3796_v19 = vpack.c.bf16 %v1008_v18, %v1007_v17  ;;  %v1600_v17 = vld [vmem:[#allocation8 + $0x18] sm:$0xff] }
 0x323   :  { %v3703_v22 = vpop.eup %3220 }
 0x324   :  { %2231 = vmatmul.mubr.f32.vlgmr.msra.gmra.mrb[10].mxu0 %v3703_v22 }
 0x325   :  { %2886 = vmatpush3.bf16.msra.mxu0 %v3518_v9  ;;  %2300 = vmatprep.mubr.msk.f32.mxu0 %vm3378_vm0, %v3379_v1 }
 0x326   :  { %2887 = vmatprep.subr.bf16.mxu0 %v3377_v0 }
 0x329   :  { %2889 = vmatpush3.bf16.msra.mxu0 %v3527_v15 }
 0x32a   :  { %2890 = vmatprep.subr.bf16.mxu0 %v3377_v0 }
 0x32d   :  { %2892 = vmatpush3.bf16.msra.mxu0 %v3537_v21 }
 0x32e   :  { %2893 = vmatprep.subr.bf16.mxu0 %v3377_v0 }
 0x331   :  { %2895 = vmatpush3.bf16.msra.mxu0 %v3550_v28 }
 0x332   :  { %2896 = vmatprep.subr.bf16.mxu0 %v3377_v0 }
 0x335   :  { %2898 = vmatpush3.bf16.msra.mxu0 %v3560_v34 }
 0x336   :  { %2899 = vmatprep.subr.bf16.mxu0 %v3377_v0 }
 0x339   :  { %2901 = vmatpush3.bf16.msra.mxu0 %v3570_v40 }
 0x33a   :  { %2902 = vmatprep.subr.bf16.mxu0 %v3377_v0 }
 0x33d   :  { %2904 = vmatpush3.bf16.msra.mxu0 %v3580_v46 }
 0x33e   :  { %2905 = vmatprep.subr.bf16.mxu0 %v3377_v0 }
 0x341   :  { %2907 = vmatpush3.bf16.msra.mxu0 %v3584_v50 }
 0x342   :  { %2932 = vmatprep.subr.bf16.mxu0 %v3377_v0 }
 0x3f7   :  { %v544_v24 = vpop.f32.mrb[10].mxu0 }
 0x3f8   :  { %v548_v25 = vadd.f32 %v544_v24, %v205_v23  ;;  %v2232_v26 = vpop.f32.mrb[11].mxu0  ;;  %v1011_v24 = vld [vmem:[#allocation5 + $0xf0] sm:$0xff] }
 0x3fa   :  { %3222 = vtanh.f32 %v548_v25  ;;  %v1012_v25 = vld [vmem:[#allocation5 + $0xf8] sm:$0xff] }
 0x3fb   :  { %v3804_v26 = vpack.c.bf16 %v1012_v25, %v1011_v24  ;;  %v1604_v24 = vld [vmem:[#allocation8 + $0x38] sm:$0xff] }
 0x404   :  { %v3725_v27 = vpop.eup %3222 }
 0x405   :  { %2266 = vmatmul.mubr.f32.vlgmr.msra.gmra.mrb[4].mxu1 %v3725_v27 }
 0x406   :  { %2910 = vmatpush3.bf16.msra.mxu1 %v3518_v9  ;;  %2335 = vmatprep.mubr.msk.f32.mxu1 %vm3378_vm0, %v3379_v1 }
 0x407   :  { %2911 = vmatprep.subr.bf16.mxu1 %v3377_v0 }
 0x40a   :  { %2913 = vmatpush3.bf16.msra.mxu1 %v3527_v15 }
 0x40b   :  { %2914 = vmatprep.subr.bf16.mxu1 %v3377_v0 }
 0x40e   :  { %2916 = vmatpush3.bf16.msra.mxu1 %v3537_v21 }
 0x40f   :  { %2917 = vmatprep.subr.bf16.mxu1 %v3377_v0 }
 0x412   :  { %2919 = vmatpush3.bf16.msra.mxu1 %v3550_v28 }
 0x413   :  { %2920 = vmatprep.subr.bf16.mxu1 %v3377_v0 }
 0x416   :  { %2922 = vmatpush3.bf16.msra.mxu1 %v3560_v34 }
 0x417   :  { %2923 = vmatprep.subr.bf16.mxu1 %v3377_v0 }
 0x41a   :  { %2925 = vmatpush3.bf16.msra.mxu1 %v3570_v40 }
 0x41b   :  { %2926 = vmatprep.subr.bf16.mxu1 %v3377_v0 }
 0x41e   :  { %2928 = vmatpush3.bf16.msra.mxu1 %v3580_v46 }
 0x41f   :  { %2929 = vmatprep.subr.bf16.mxu1 %v3377_v0 }
 0x422   :  { %2931 = vmatpush3.bf16.msra.mxu1 %v3584_v50 }
 0x4d8   :  { %v619_v30 = vpop.f32.mrb[4].mxu1 }
 0x4d9   :  { %v623_v31 = vadd.f32 %v619_v30, %v210_v29  ;;  %v2267_v32 = vpop.f32.mrb[5].mxu1 }
 0x4db   :  { %3224 = vtanh.f32 %v623_v31 }
 0x4e5   :  { %v3747_v33 = vpop.eup %3224 }
 0x4e6   :  { %2301 = vmatmul.mubr.f32.vlgmr.msra.gmra.mrb[12].mxu0 %v3747_v33 }
 0x4e7   :  { %2934 = vmatpush3.bf16.msra.mxu0 %v3518_v9  ;;  %2370 = vmatprep.mubr.msk.f32.mxu0 %vm3378_vm0, %v3379_v1  ;;  %v851_v9 = vld [vmem:[#allocation3] sm:$0xff] }
 0x4e8   :  { %2935 = vmatprep.subr.bf16.mxu0 %v3377_v0 }
 0x4eb   :  { %2937 = vmatpush3.bf16.msra.mxu0 %v3527_v15  ;;  %v852_v15 = vld [vmem:[#allocation3 + $0x8] sm:$0xff] }
 0x4ec   :  { %2938 = vmatprep.subr.bf16.mxu0 %v3377_v0 }
 0x4ef   :  { %2940 = vmatpush3.bf16.msra.mxu0 %v3537_v21  ;;  %v2956_v21 = vpack.c.bf16 %v852_v15, %v851_v9 }
 0x4f0   :  { %2941 = vmatprep.subr.bf16.mxu0 %v3377_v0 }
 0x4f1   :  { %2957 = vmatprep.subr.bf16.mxu1 %v2956_v21 }
 0x4f3   :  { %2943 = vmatpush3.bf16.msra.mxu0 %v3550_v28  ;;  %v215_v28 = vadd.f32 %v3672_v6, %v3648_v58  ;;  %v3784_v6 = vpack.c.bf16 %v1002_v5, %v1001_v4 }
 0x4f4   :  { %2944 = vmatprep.subr.bf16.mxu0 %v3377_v0 }
 0x4f7   :  { %2946 = vmatpush3.bf16.msra.mxu0 %v3560_v34 }
 0x4f8   :  { %2947 = vmatprep.subr.bf16.mxu0 %v3377_v0 }
 0x4fb   :  { %2949 = vmatpush3.bf16.msra.mxu0 %v3570_v40 }
 0x4fc   :  { %2950 = vmatprep.subr.bf16.mxu0 %v3377_v0 }
 0x4ff   :  { %2952 = vmatpush3.bf16.msra.mxu0 %v3580_v46  ;;  %v2968_v46 = vpack.c.bf16 %v858_v45, %v857_v44 }
 0x500   :  { %2953 = vmatprep.subr.bf16.mxu0 %v3377_v0 }
 0x503   :  { %2955 = vmatpush3.bf16.msra.mxu0 %v3584_v50  ;;  %v861_v50 = vld [vmem:[#allocation3 + $0x50] sm:$0xff] }
 0x504   :  { %2988 = vmatprep.subr.bf16.mxu0 %v3377_v0  ;;  %v2976_v52 = vpack.c.bf16 %v862_v51, %v861_v50 }
 0x5b9   :  { %v694_v34 = vpop.f32.mrb[12].mxu0 }
 0x5ba   :  { %v698_v35 = vadd.f32 %v694_v34, %v215_v28  ;;  %v2302_v36 = vpop.f32.mrb[13].mxu0  ;;  %v225_v34 = vadd.f32 %v3676_v8, %v3648_v58 }
 0x5bc   :  { %3226 = vtanh.f32 %v698_v35 }
 0x5c6   :  { %v3227_v40 = vpop.eup %3226 }
 0x5c7   :  { %2336 = vmatmul.mubr.f32.vlgmr.msra.gmra.mrb[6].mxu1 %v3227_v40 }
 0x5c8   :  { %2959 = vmatpush3.bf16.msra.mxu1 %v2956_v21  ;;  %2405 = vmatprep.mubr.f32.mxu1 %v3651_v3  ;;  %v3780_v3 = vpack.c.bf16 %v1000_v2, %v999_v63 }
 0x5c9   :  { %2961 = vmatprep.subr.bf16.mxu1 %v2960_v39 }
 0x5cc   :  { %2963 = vmatpush3.bf16.msra.mxu1 %v2960_v39  ;;  %v3861_v39 = vld [vmem:[#allocation7 + $0x1] ss:$0 sm:$0xff] }
 0x5cd   :  { %2965 = vmatprep.subr.bf16.mxu1 %v2964_v43 }
 0x5d0   :  { %2967 = vmatpush3.bf16.msra.mxu1 %v2964_v43 }
 0x5d1   :  { %2969 = vmatprep.subr.bf16.mxu1 %v2968_v46 }
 0x5d4   :  { %2971 = vmatpush3.bf16.msra.mxu1 %v2968_v46 }
 0x5d5   :  { %2973 = vmatprep.subr.bf16.mxu1 %v2972_v49 }
 0x5d8   :  { %2975 = vmatpush3.bf16.msra.mxu1 %v2972_v49 }
 0x5d9   :  { %2977 = vmatprep.subr.bf16.mxu1 %v2976_v52 }
 0x5dc   :  { %2979 = vmatpush3.bf16.msra.mxu1 %v2976_v52 }
 0x5dd   :  { %2981 = vmatprep.subr.bf16.mxu1 %v2980_v55 }
 0x5e0   :  { %2983 = vmatpush3.bf16.msra.mxu1 %v2980_v55 }
 0x5e1   :  { %2985 = vmatprep.subr.bf16.mxu1 %v2984_v59 }
 0x5e4   :  { %2987 = vmatpush3.bf16.msra.mxu1 %v2984_v59 }
 0x5e5   :  { %3012 = vmatprep.subr.bf16.mxu1 %v3377_v0 }
 0x5e7   :  { %2406 = vmatmul.mubr.f32.vlgmr.msra.gmra.mrb[8].mxu1 %v3681_v16  ;;  %v3792_v16 = vpack.c.bf16 %v1006_v14, %v1005_v13  ;;  %v1598_v13 = vld [vmem:[#allocation8 + $0x8] sm:$0xff]  ;;  %v1599_v14 = vld [vmem:[#allocation8 + $0x10] sm:$0xff] }
 0x5e8   :  { %2408 = vmatprep.mubr.f32.mxu1 %v3703_v22  ;;  %3014 = vmatpush3.bf16.msra.mxu1 %v3776_v62  ;;  %v1010_v22 = vld [vmem:[#allocation5 + $0xe8] sm:$0xff]  ;;  %v3184_v18 = vpack.c.bf16 %v1600_v17, %v1599_v14 }
 0x5e9   :  { %3015 = vmatprep.subr.bf16.mxu1 %v3377_v0  ;;  %v3800_v23 = vpack.c.bf16 %v1010_v22, %v1009_v20  ;;  %v1602_v20 = vld [vmem:[#allocation8 + $0x28] sm:$0xff] }
 0x5eb   :  { %2409 = vmatmul.mubr.f32.gmra.mrb[10].mxu1 %v3725_v27  ;;  %v220_v27 = vadd.f32 %v3648_v58, %v3678_v10 }
 0x5ec   :  { %2411 = vmatprep.mubr.f32.mxu1 %v3747_v33  ;;  %3017 = vmatpush3.bf16.msra.mxu1 %v3780_v3 }
 0x5ed   :  { %3018 = vmatprep.subr.bf16.mxu1 %v3377_v0 }
 0x5ef   :  { %2412 = vmatmul.mubr.f32.gmra.mrb[12].mxu1 %v3227_v40 }
 0x5f0   :  { %3020 = vmatpush3.bf16.msra.mxu1 %v3784_v6 }
 0x5f1   :  { %3021 = vmatprep.subr.bf16.mxu1 %v3377_v0 }
 0x5f4   :  { %3023 = vmatpush3.bf16.msra.mxu1 %v3788_v12 }
 0x5f5   :  { %3024 = vmatprep.subr.bf16.mxu1 %v3377_v0 }
 0x5f8   :  { %3026 = vmatpush3.bf16.msra.mxu1 %v3792_v16 }
 0x5f9   :  { %3027 = vmatprep.subr.bf16.mxu1 %v3377_v0 }
 0x5fc   :  { %3029 = vmatpush3.bf16.msra.mxu1 %v3796_v19 }
 0x5fd   :  { %3030 = vmatprep.subr.bf16.mxu1 %v3377_v0 }
 0x600   :  { %3032 = vmatpush3.bf16.msra.mxu1 %v3800_v23 }
 0x601   :  { %3033 = vmatprep.subr.bf16.mxu1 %v3377_v0 }
 0x604   :  { %3035 = vmatpush3.bf16.msra.mxu1 %v3804_v26 }
 0x605   :  { %3060 = vmatprep.subr.bf16.mxu1 %v3377_v0 }
 0x69a   :  { %v769_v29 = vpop.f32.mrb[6].mxu1 }
 0x69b   :  { %v773_v30 = vadd.f32 %v769_v29, %v220_v27  ;;  %v2337_v31 = vpop.f32.mrb[7].mxu1 }
 0x69d   :  { %3228 = vtanh.f32 %v773_v30 }
 0x6a7   :  { %v3229_v32 = vpop.eup %3228 }
 0x6a8   :  { %2371 = vmatmul.mubr.f32.vlgmr.msra.gmra.mrb[14].mxu0 %v3229_v32  ;;  %2414 = vmatprep.mubr.f32.mxu1 %v3229_v32 }
 0x6a9   :  { %2990 = vmatpush3.bf16.msra.mxu0 %v3776_v62  ;;  %2449 = vmatprep.mubr.msk.f32.mxu0 %vm3378_vm0, %v3379_v1 }
 0x6aa   :  { %2991 = vmatprep.subr.bf16.mxu0 %v3377_v0 }
 0x6ad   :  { %2993 = vmatpush3.bf16.msra.mxu0 %v3780_v3 }
 0x6ae   :  { %2994 = vmatprep.subr.bf16.mxu0 %v3377_v0 }
 0x6b1   :  { %2996 = vmatpush3.bf16.msra.mxu0 %v3784_v6 }
 0x6b2   :  { %2997 = vmatprep.subr.bf16.mxu0 %v3377_v0 }
 0x6b5   :  { %2999 = vmatpush3.bf16.msra.mxu0 %v3788_v12 }
 0x6b6   :  { %3000 = vmatprep.subr.bf16.mxu0 %v3377_v0 }
 0x6b9   :  { %3002 = vmatpush3.bf16.msra.mxu0 %v3792_v16 }
 0x6ba   :  { %v3821_v10 = vpop.f32.mrb[8].mxu1  ;;  %3003 = vmatprep.subr.bf16.mxu0 %v3377_v0 }
 0x6bb   :  { %v949_v33 = vpop.f32.mrb[9].mxu1  ;;  %v955_v45 = vadd.f32 %v3821_v10, %v3861_v39 }
 0x6bc   :  { %v950_v40 = vadd.f32 %v3861_v39, %v949_v33  ;;  %v1607_v33 = vld [vmem:[#allocation8 + $0x50] sm:$0xff] }
 0x6bd   :  { %3005 = vmatpush3.bf16.msra.mxu0 %v3796_v19 }
 0x6be   :  { %v3825_v9 = vpop.f32.mrb[10].mxu1  ;;  %3006 = vmatprep.subr.bf16.mxu0 %v3377_v0 }
 0x6bf   :  { %v3828_v15 = vpop.f32.mrb[11].mxu1  ;;  %v965_v55 = vadd.f32 %v3825_v9, %v3861_v39  ;;  %v1608_v9 = vld [vmem:[#allocation8 + $0x58] sm:$0xff] }
 0x6c0   :  { %v960_v50 = vadd.f32 %v3861_v39, %v3828_v15  ;;  %v3196_v15 = vpack.c.bf16 %v1608_v9, %v1607_v33 }
 0x6c1   :  { %3008 = vmatpush3.bf16.msra.mxu0 %v3800_v23 }
 0x6c2   :  { %v3831_v21 = vpop.f32.mrb[12].mxu1  ;;  %3009 = vmatprep.subr.bf16.mxu0 %v3377_v0 }
 0x6c3   :  { %v3834_v28 = vpop.f32.mrb[13].mxu1 }
 0x6c4   :  { %v970_v61 = vadd.f32 %v3861_v39, %v3834_v28  ;;  %v1610_v28 = vld [vmem:[#allocation8 + $0x68] sm:$0xff] }
 0x6c5   :  { %3011 = vmatpush3.bf16.msra.mxu0 %v3804_v26 }
 0x6c6   :  { %3036 = vmatprep.subr.bf16.mxu0 %v3377_v0 }
 0x6c8   :  { %2450 = vmatmul.mubr.f32.vlgmr.msra.gmra.mrb[16].mxu0 %v3379_v1 }
 0x6c9   :  { %3038 = vmatpush3.bf16.msra.mxu0 %v3776_v62  ;;  %2519 = vmatprep.mubr.msk.f32.mxu0 %vm3378_vm0, %v3379_v1 }
 0x6ca   :  { %3039 = vmatprep.subr.bf16.mxu0 %v3377_v0 }
 0x6cd   :  { %3041 = vmatpush3.bf16.msra.mxu0 %v3780_v3 }
 0x6ce   :  { %3042 = vmatprep.subr.bf16.mxu0 %v3377_v0 }
 0x6d1   :  { %3044 = vmatpush3.bf16.msra.mxu0 %v3784_v6 }
 0x6d2   :  { %3045 = vmatprep.subr.bf16.mxu0 %v3377_v0 }
 0x6d5   :  { %3047 = vmatpush3.bf16.msra.mxu0 %v3788_v12 }
 0x6d6   :  { %3048 = vmatprep.subr.bf16.mxu0 %v3377_v0 }
 0x6d9   :  { %3050 = vmatpush3.bf16.msra.mxu0 %v3792_v16 }
 0x6da   :  { %3051 = vmatprep.subr.bf16.mxu0 %v3377_v0 }
 0x6dd   :  { %3053 = vmatpush3.bf16.msra.mxu0 %v3796_v19 }
 0x6de   :  { %3054 = vmatprep.subr.bf16.mxu0 %v3377_v0 }
 0x6e1   :  { %3056 = vmatpush3.bf16.msra.mxu0 %v3800_v23 }
 0x6e2   :  { %3057 = vmatprep.subr.bf16.mxu0 %v3377_v0 }
 0x6e5   :  { %3059 = vmatpush3.bf16.msra.mxu0 %v3804_v26 }
 0x6e6   :  { %3084 = vmatprep.subr.bf16.mxu0 %v3377_v0 }
 0x77b   :  { %v844_v35 = vpop.f32.mrb[14].mxu0 }
 0x77c   :  { %v848_v36 = vadd.f32 %v844_v35, %v225_v34  ;;  %v2372_v37 = vpop.f32.mrb[15].mxu0  ;;  %v1611_v35 = vld [vmem:[#allocation8 + $0x70] sm:$0xff] }
 0x77e   :  { %3230 = vtanh.f32 %v848_v36  ;;  %v1612_v36 = vld [vmem:[#allocation8 + $0x78] sm:$0xff] }
 0x77f   :  { %v3202_v37 = vpack.c.bf16 %v1612_v36, %v1611_v35 }
 0x788   :  { %v3231_v38 = vpop.eup %3230 }
 0x789   :  { %2415 = vmatmul.mubr.f32.gmra.mrb[14].mxu1 %v3231_v38 }
 0x78a   :  { %2484 = vmatprep.mubr.msk.f32.mxu1 %vm3378_vm0, %v3379_v1 }
 0x79b   :  { %v1080_v41 = vpop.f32.mrb[16].mxu0 }
 0x79c   :  { %v1084_v42 = vadd.f32 %v1080_v41, %v950_v40  ;;  %v2451_v43 = vpop.f32.mrb[17].mxu0 }
 0x79e   :  { %3232 = vtanh.f32 %v1084_v42 }
 0x7a8   :  { %v3233_v44 = vpop.eup %3232 }
 0x7a9   :  { %2485 = vmatmul.mubr.f32.vlgmr.msra.gmra.mrb[16].mxu1 %v3233_v44  ;;  %v1711_v44 = vld [vmem:[#allocation10] ss:$0 sm:$0xff] }
 0x7aa   :  { %3062 = vmatpush3.bf16.msra.mxu1 %v3776_v62  ;;  %2554 = vmatprep.mubr.msk.f32.mxu1 %vm3378_vm0, %v3379_v1 }
 0x7ab   :  { %3063 = vmatprep.subr.bf16.mxu1 %v3377_v0 }
 0x7ae   :  { %3065 = vmatpush3.bf16.msra.mxu1 %v3780_v3 }
 0x7af   :  { %3066 = vmatprep.subr.bf16.mxu1 %v3377_v0 }
 0x7b2   :  { %3068 = vmatpush3.bf16.msra.mxu1 %v3784_v6 }
 0x7b3   :  { %3069 = vmatprep.subr.bf16.mxu1 %v3377_v0 }
 0x7b6   :  { %3071 = vmatpush3.bf16.msra.mxu1 %v3788_v12 }
 0x7b7   :  { %3072 = vmatprep.subr.bf16.mxu1 %v3377_v0 }
 0x7ba   :  { %3074 = vmatpush3.bf16.msra.mxu1 %v3792_v16 }
 0x7bb   :  { %3075 = vmatprep.subr.bf16.mxu1 %v3377_v0 }
 0x7be   :  { %3077 = vmatpush3.bf16.msra.mxu1 %v3796_v19 }
 0x7bf   :  { %3078 = vmatprep.subr.bf16.mxu1 %v3377_v0 }
 0x7c2   :  { %3080 = vmatpush3.bf16.msra.mxu1 %v3800_v23 }
 0x7c3   :  { %3081 = vmatprep.subr.bf16.mxu1 %v3377_v0 }
 0x7c6   :  { %3083 = vmatpush3.bf16.msra.mxu1 %v3804_v26 }
 0x7c7   :  { %3108 = vmatprep.subr.bf16.mxu1 %v3377_v0 }
 0x85c   :  { %v3882_v58 = vpop.f32.mrb[14].mxu1 }
 0x85d   :  { %v3884_v8 = vpop.f32.mrb[15].mxu1  ;;  %v985_v38 = vadd.f32 %v3882_v58, %v3861_v39 }
 0x85e   :  { %v980_v29 = vadd.f32 %v3861_v39, %v3884_v8 }
 0x87c   :  { %v1153_v46 = vpop.f32.mrb[16].mxu1 }
 0x87d   :  { %v1157_v47 = vadd.f32 %v1153_v46, %v955_v45  ;;  %v2486_v48 = vpop.f32.mrb[17].mxu1 }
 0x87f   :  { %3234 = vtanh.f32 %v1157_v47 }
 0x889   :  { %v3235_v49 = vpop.eup %3234 }
 0x88a   :  { %2520 = vmatmul.mubr.f32.vlgmr.msra.gmra.mrb[18].mxu0 %v3235_v49 }
 0x88b   :  { %3086 = vmatpush3.bf16.msra.mxu0 %v3776_v62  ;;  %2589 = vmatprep.mubr.msk.f32.mxu0 %vm3378_vm0, %v3379_v1 }
 0x88c   :  { %3087 = vmatprep.subr.bf16.mxu0 %v3377_v0 }
 0x88f   :  { %3089 = vmatpush3.bf16.msra.mxu0 %v3780_v3 }
 0x890   :  { %3090 = vmatprep.subr.bf16.mxu0 %v3377_v0 }
 0x893   :  { %3092 = vmatpush3.bf16.msra.mxu0 %v3784_v6 }
 0x894   :  { %3093 = vmatprep.subr.bf16.mxu0 %v3377_v0 }
 0x897   :  { %3095 = vmatpush3.bf16.msra.mxu0 %v3788_v12 }
 0x898   :  { %3096 = vmatprep.subr.bf16.mxu0 %v3377_v0 }
 0x89b   :  { %3098 = vmatpush3.bf16.msra.mxu0 %v3792_v16 }
 0x89c   :  { %3099 = vmatprep.subr.bf16.mxu0 %v3377_v0 }
 0x89f   :  { %3101 = vmatpush3.bf16.msra.mxu0 %v3796_v19 }
 0x8a0   :  { %3102 = vmatprep.subr.bf16.mxu0 %v3377_v0 }
 0x8a3   :  { %3104 = vmatpush3.bf16.msra.mxu0 %v3800_v23 }
 0x8a4   :  { %3105 = vmatprep.subr.bf16.mxu0 %v3377_v0 }
 0x8a7   :  { %3107 = vmatpush3.bf16.msra.mxu0 %v3804_v26 }
 0x8a8   :  { %3132 = vmatprep.subr.bf16.mxu0 %v3377_v0 }
 0x95d   :  { %v1226_v51 = vpop.f32.mrb[18].mxu0 }
 0x95e   :  { %v1230_v52 = vadd.f32 %v1226_v51, %v960_v50  ;;  %v2521_v53 = vpop.f32.mrb[19].mxu0 }
 0x960   :  { %3236 = vtanh.f32 %v1230_v52 }
 0x96a   :  { %v3237_v54 = vpop.eup %3236 }
 0x96b   :  { %2555 = vmatmul.mubr.f32.vlgmr.msra.gmra.mrb[18].mxu1 %v3237_v54 }
 0x96c   :  { %3110 = vmatpush3.bf16.msra.mxu1 %v3776_v62  ;;  %2624 = vmatprep.mubr.msk.f32.mxu1 %vm3378_vm0, %v3379_v1 }
 0x96d   :  { %3111 = vmatprep.subr.bf16.mxu1 %v3377_v0 }
 0x970   :  { %3113 = vmatpush3.bf16.msra.mxu1 %v3780_v3 }
 0x971   :  { %3114 = vmatprep.subr.bf16.mxu1 %v3377_v0 }
 0x974   :  { %3116 = vmatpush3.bf16.msra.mxu1 %v3784_v6 }
 0x975   :  { %3117 = vmatprep.subr.bf16.mxu1 %v3377_v0 }
 0x978   :  { %3119 = vmatpush3.bf16.msra.mxu1 %v3788_v12 }
 0x979   :  { %3120 = vmatprep.subr.bf16.mxu1 %v3377_v0 }
 0x97c   :  { %3122 = vmatpush3.bf16.msra.mxu1 %v3792_v16 }
 0x97d   :  { %3123 = vmatprep.subr.bf16.mxu1 %v3377_v0 }
 0x980   :  { %3125 = vmatpush3.bf16.msra.mxu1 %v3796_v19 }
 0x981   :  { %3126 = vmatprep.subr.bf16.mxu1 %v3377_v0 }
 0x984   :  { %3128 = vmatpush3.bf16.msra.mxu1 %v3800_v23 }
 0x985   :  { %3129 = vmatprep.subr.bf16.mxu1 %v3377_v0 }
 0x988   :  { %3131 = vmatpush3.bf16.msra.mxu1 %v3804_v26 }
 0x989   :  { %3156 = vmatprep.subr.bf16.mxu1 %v3377_v0 }
 0xa3e   :  { %v1299_v56 = vpop.f32.mrb[18].mxu1 }
 0xa3f   :  { %v1303_v57 = vadd.f32 %v1299_v56, %v965_v55  ;;  %v2556_v59 = vpop.f32.mrb[19].mxu1 }
 0xa41   :  { %3238 = vtanh.f32 %v1303_v57 }
 0xa4b   :  { %v3239_v60 = vpop.eup %3238 }
 0xa4c   :  { %2590 = vmatmul.mubr.f32.vlgmr.msra.gmra.mrb[20].mxu0 %v3239_v60 }
 0xa4d   :  { %3134 = vmatpush3.bf16.msra.mxu0 %v3776_v62  ;;  %2659 = vmatprep.mubr.msk.f32.mxu0 %vm3378_vm0, %v3379_v1 }
 0xa4e   :  { %3135 = vmatprep.subr.bf16.mxu0 %v3377_v0 }
 0xa51   :  { %3137 = vmatpush3.bf16.msra.mxu0 %v3780_v3 }
 0xa52   :  { %3138 = vmatprep.subr.bf16.mxu0 %v3377_v0 }
 0xa55   :  { %3140 = vmatpush3.bf16.msra.mxu0 %v3784_v6 }
 0xa56   :  { %3141 = vmatprep.subr.bf16.mxu0 %v3377_v0 }
 0xa59   :  { %3143 = vmatpush3.bf16.msra.mxu0 %v3788_v12 }
 0xa5a   :  { %3144 = vmatprep.subr.bf16.mxu0 %v3377_v0 }
 0xa5d   :  { %3146 = vmatpush3.bf16.msra.mxu0 %v3792_v16 }
 0xa5e   :  { %3147 = vmatprep.subr.bf16.mxu0 %v3377_v0 }
 0xa61   :  { %3149 = vmatpush3.bf16.msra.mxu0 %v3796_v19 }
 0xa62   :  { %3150 = vmatprep.subr.bf16.mxu0 %v3377_v0 }
 0xa65   :  { %3152 = vmatpush3.bf16.msra.mxu0 %v3800_v23 }
 0xa66   :  { %3153 = vmatprep.subr.bf16.mxu0 %v3377_v0 }
 0xa69   :  { %3155 = vmatpush3.bf16.msra.mxu0 %v3804_v26 }
 0xa6a   :  { %3180 = vmatprep.subr.bf16.mxu0 %v3377_v0 }
 0xb1f   :  { %v1372_v63 = vpop.f32.mrb[20].mxu0 }
 0xb20   :  { %v1376_v2 = vadd.f32 %v1372_v63, %v970_v61  ;;  %v2591_v4 = vpop.f32.mrb[21].mxu0 }
 0xb22   :  { %3240 = vtanh.f32 %v1376_v2 }
 0xb2c   :  { %v3241_v5 = vpop.eup %3240 }
 0xb2d   :  { %2625 = vmatmul.mubr.f32.vlgmr.msra.gmra.mrb[20].mxu1 %v3241_v5 }
 0xb2e   :  { %3158 = vmatpush3.bf16.msra.mxu1 %v3776_v62  ;;  %2694 = vmatprep.mubr.msk.f32.mxu1 %vm3378_vm0, %v3379_v1  ;;  %v975_v62 = vadd.f32 %v3831_v21, %v3861_v39  ;;  %v1609_v21 = vld [vmem:[#allocation8 + $0x60] sm:$0xff] }
 0xb2f   :  { %3159 = vmatprep.subr.bf16.mxu1 %v3377_v0  ;;  %v3199_v34 = vpack.c.bf16 %v1610_v28, %v1609_v21 }
 0xb32   :  { %3161 = vmatpush3.bf16.msra.mxu1 %v3780_v3 }
 0xb33   :  { %3162 = vmatprep.subr.bf16.mxu1 %v3377_v0 }
 0xb36   :  { %3164 = vmatpush3.bf16.msra.mxu1 %v3784_v6 }
 0xb37   :  { %3165 = vmatprep.subr.bf16.mxu1 %v3377_v0 }
 0xb3a   :  { %3167 = vmatpush3.bf16.msra.mxu1 %v3788_v12  ;;  %v1597_v12 = vld [vmem:[#allocation8] sm:$0xff] }
 0xb3b   :  { %3168 = vmatprep.subr.bf16.mxu1 %v3377_v0 }
 0xb3e   :  { %3170 = vmatpush3.bf16.msra.mxu1 %v3792_v16  ;;  %v3181_v16 = vpack.c.bf16 %v1598_v13, %v1597_v12 }
 0xb3f   :  { %3171 = vmatprep.subr.bf16.mxu1 %v3377_v0 }
 0xb42   :  { %3173 = vmatpush3.bf16.msra.mxu1 %v3796_v19  ;;  %v1601_v19 = vld [vmem:[#allocation8 + $0x20] sm:$0xff] }
 0xb43   :  { %3174 = vmatprep.subr.bf16.mxu1 %v3377_v0  ;;  %v3187_v22 = vpack.c.bf16 %v1602_v20, %v1601_v19 }
 0xb46   :  { %3176 = vmatpush3.bf16.msra.mxu1 %v3800_v23  ;;  %v1603_v23 = vld [vmem:[#allocation8 + $0x30] sm:$0xff] }
 0xb47   :  { %3177 = vmatprep.subr.bf16.mxu1 %v3377_v0  ;;  %v3190_v25 = vpack.c.bf16 %v1604_v24, %v1603_v23 }
 0xb4a   :  { %3179 = vmatpush3.bf16.msra.mxu1 %v3804_v26  ;;  %v1606_v26 = vld [vmem:[#allocation8 + $0x48] sm:$0xff] }
 0xc00   :  { %v1445_v3 = vpop.f32.mrb[20].mxu1 }
 0xc01   :  { %v1449_v6 = vadd.f32 %v1445_v3, %v975_v62  ;;  %v2626_v7 = vpop.f32.mrb[21].mxu1 }
 0xc03   :  { %3242 = vtanh.f32 %v1449_v6 }
 0xc0d   :  { %v3243_v11 = vpop.eup %3242 }
 0xc0e   :  { %2660 = vmatmul.mubr.f32.vlgmr.msra.gmra.mrb[22].mxu0 %v3243_v11 }
 0xc0f   :  { %2729 = vmatprep.mubr.msk.f32.mxu0 %vm3378_vm0, %v3379_v1  ;;  %3182 = vmatpush3.bf16.msra.mxu0 %v3181_v16  ;;  %v1605_v1 = vld [vmem:[#allocation8 + $0x40] sm:$0xff] }
 0xc10   :  { %3183 = vmatprep.subr.bf16.mxu0 %v3377_v0  ;;  %v3193_v27 = vpack.c.bf16 %v1606_v26, %v1605_v1 }
 0xc13   :  { %3185 = vmatpush3.bf16.msra.mxu0 %v3184_v18 }
 0xc14   :  { %3186 = vmatprep.subr.bf16.mxu0 %v3377_v0 }
 0xc17   :  { %3188 = vmatpush3.bf16.msra.mxu0 %v3187_v22 }
 0xc18   :  { %3189 = vmatprep.subr.bf16.mxu0 %v3377_v0 }
 0xc1b   :  { %3191 = vmatpush3.bf16.msra.mxu0 %v3190_v25 }
 0xc1c   :  { %3192 = vmatprep.subr.bf16.mxu0 %v3377_v0 }
 0xc1f   :  { %3194 = vmatpush3.bf16.msra.mxu0 %v3193_v27 }
 0xc20   :  { %3195 = vmatprep.subr.bf16.mxu0 %v3377_v0 }
 0xc23   :  { %3197 = vmatpush3.bf16.msra.mxu0 %v3196_v15 }
 0xc24   :  { %3198 = vmatprep.subr.bf16.mxu0 %v3377_v0 }
 0xc27   :  { %3200 = vmatpush3.bf16.msra.mxu0 %v3199_v34 }
 0xc28   :  { %3201 = vmatprep.subr.bf16.mxu0 %v3377_v0 }
 0xc2b   :  { %3203 = vmatpush3.bf16.msra.mxu0 %v3202_v37 }
 0xce1   :  { %v1518_v30 = vpop.f32.mrb[22].mxu0 }
 0xce2   :  { %v1522_v31 = vadd.f32 %v1518_v30, %v980_v29  ;;  %v2661_v32 = vpop.f32.mrb[23].mxu0 }
 0xce4   :  { %3244 = vtanh.f32 %v1522_v31 }
 0xcee   :  { %v3245_v10 = vpop.eup %3244 }
 0xcef   :  { %2695 = vmatmul.mubr.f32.vlgmr.msra.gmra.mrb[22].mxu1 %v3245_v10 }
 0xdc2   :  { %v1591_v40 = vpop.f32.mrb[22].mxu1 }
 0xdc3   :  { %v1595_v41 = vadd.f32 %v1591_v40, %v985_v38  ;;  %v2696_v42 = vpop.f32.mrb[23].mxu1 }
 0xdc5   :  { %3246 = vtanh.f32 %v1595_v41 }
 0xdcf   :  { %v3247_v43 = vpop.eup %3246 }
 0xdd0   :  { %2730 = vmatmul.mubr.f32.vlgmr.msra.gmra.mrb[24].mxu0 %v3247_v43 }
 0xea3   :  { %v1686_v8 = vpop.f32.mrb[24].mxu0 }
 0xea4   :  { %v1687_v45 = vadd.f32 %v1711_v44, %v1686_v8  ;;  %v2731_v46 = vpop.f32.mrb[25].mxu0 }
 0xea6   :  { %1690 = vmax.xlane.f32.xlu0 %v1687_v45 }
 0xf33   :  { %v1691_v47 = vpop.xlane.xlu0 %1690 }
 0xf34   :  { %v1692_v48 = vsub.f32 %v1687_v45, %v1691_v47 }
 0xf36   :  { %v1693_v49 = vmul.f32 1.442695, %v1692_v48 }
 0xf38   :  { %3248 = vpow2.f32 %v1693_v49 }
 0xf42   :  { %v3249_v0 = vpop.eup %3248 }
 0xf43   :  { %1695 = vadd.xlane.f32.xlu0 %v3249_v0 }
 0xfd0   :  { %v1696_v50 = vpop.xlane.xlu0 %1695 }
 0xfd1   :  { %3250 = vlog2.f32 %v1696_v50 }
 0xfdb   :  { %v3251_v39 = vpop.eup %3250 }
 0xfdc   :  { %v1698_v58 = vmul.f32 0.6931472, %v3251_v39 }
 0xfde   :  { %v1699_v51 = vadd.f32 %v1698_v58, %v1691_v47 }
 0xfe0   :  { %v1700_v52 = vsub.f32 %v1687_v45, %v1699_v51 }
 0xfe2   :  { %1701 = vst [vmem:[%s3990_s7] sm:$0xff] %v1700_v52 }
 0xfe3   :  { %1706 = vsyncpa [#allocation4], 1 }
 0xfe4   :  { %1707 = vsyncpa [#allocation6], 1 }
 0xfe5   :  { %1708 = vsyncpa [#allocation9], 1 }

</bundles_post_ra>
